<compile_context>
chip_gen: v6e
topology: v6e:2x2x1
jax: 0.10.0
libtpu: 0.0.40
codegen_flags: <defaults>
</compile_context>

<pallas_src>
import functools

import jax
import jax.numpy as jnp
from jax import lax
from jax.experimental import pallas as pl
from jax.experimental.pallas import tpu as pltpu


def residual_stack_kernel(x_ref, w0_ref, w1_ref, wrs_ref, skip_ref, *,
                          dilations, res_ch, compute_dtype):
    """Full residual stack for one block of batch elements (NCT layout).

    x_ref:    (bb, R, T)   residual-stream input block, time on the lane axis.
    w0_ref:   (L, 2R, R)   packed [Wf_tap0; Wg_tap0]  -- multiplies x[t-d].
    w1_ref:   (L, 2R, R)   packed [Wf_tap1; Wg_tap1]  -- multiplies x[t].
    wrs_ref:  (L, R+S, R)  packed [Wres; Wskip] 1x1 conv weights.
    skip_ref: (bb, S, T)   sum of all skip connections (output).
    """
    R = res_ch
    cdt = compute_dtype
    bb = x_ref.shape[0]
    T = x_ref.shape[2]
    S = skip_ref.shape[1]

    # Precompute the unique causal masks once (reused across layers & batch).
    # mask True <=> t >= d, matching F.pad((d, 0)) of the conv outputs.
    t_idx = lax.broadcasted_iota(jnp.int32, (1, T), 1)
    masks = {d: (t_idx >= d) for d in set(dilations)}

    for b in range(bb):
        x = x_ref[b].astype(jnp.float32)            # (R, T) residual stream, f32
        skip_acc = jnp.zeros((S, T), jnp.float32)

        for l, d in enumerate(dilations):
            # Per-layer weight slices: cheap VMEM->vreg loads hidden under the
            # matmuls; holding all L layers live would blow the vreg file.
            w0 = w0_ref[l]                          # (2R, R)
            w1 = w1_ref[l]                          # (2R, R)
            wrs = wrs_ref[l]                        # (R+S, R)

            # One cast per layer (bf16 path halves cast / roll / EUP traffic).
            x_c = x.astype(cdt)
            # Causal shift along the lane (time) axis on the XLU:
            #   x_shift[:, t] = x_c[:, t - d]  (wrap-around lands at t < d,
            #   which is zeroed by the mask below).
            x_shift = pltpu.roll(x_c, shift=d, axis=1)

            # Dilated causal conv, filter+gate fused along M, split over the
            # two taps (two small dots; no per-layer sublane concatenate).
            # NOTE: pass precision=lax.Precision.HIGHEST here if exact f32
            # parity with a strict f32 reference is required (MXU is ~idle).
            fg = (jnp.dot(w0, x_shift, preferred_element_type=jnp.float32)
                  + jnp.dot(w1, x_c, preferred_element_type=jnp.float32))

            # Gated activation in the compute dtype (bf16 EUP on v6e/v7x);
            # residual add and skip accumulation stay f32.
            f = fg[:R].astype(cdt)
            g = fg[R:].astype(cdt)
            z = jnp.where(masks[d], jnp.tanh(f) * jax.nn.sigmoid(g), 0.0)

            # Fused 1x1 residual + skip conv: one dot per layer.
            rs = jnp.dot(wrs, z, preferred_element_type=jnp.float32)
            x = x + rs[:R]
            skip_acc = skip_acc + rs[R:]

        # Lane-dense store: last dim T (multiple of 128 / full block).
        skip_ref[b] = skip_acc.astype(skip_ref.dtype)

    # TODO(synk): for production-size T, add an inner lane-tiling loop over T
    # (512-2048 lanes) running all L layers per tile with a per-layer
    # (R, max_dilation) carry buffer for the causal shift, so x / skip_acc stay
    # vreg-resident and per-layer VMEM round-trips drop from O(L*T) to O(T).


# --------------------------- wrapper-side helpers ---------------------------

def _device_kind():
    try:
        return jax.devices()[0].device_kind.lower()
    except Exception:
        return ""


def _default_compute_dtype():
    # bf16 VPU/EUP exist from v6e on; keep f32 on v5e and older (bf16 feed
    # there only adds cast work since the kernel is not MXU-bound).
    kind = _device_kind()
    if any(tag in kind for tag in ("v6", "v7", "7x")):
        return jnp.bfloat16
    return jnp.float32


def _prefer_multi_step():
    # Multi-TensorCore chips (megacore v4/v5p, v7x) want grid >= 2 so the
    # "parallel" axis can be sharded across cores; single-TC chips (v5e/v6e)
    # prefer the largest block / fewest grid steps.
    kind = _device_kind()
    if not kind:
        return True
    single_tc = ("lite" in kind) or ("v5e" in kind) or ("v6e" in kind)
    return not single_tc


def _vmem_capacity_bytes():
    try:
        return int(pltpu.get_tpu_info().vmem_capacity_bytes)
    except Exception:
        return 64 << 20   # conservative: v7x per-core size


def _per_step_vmem_bytes(bb, R, S, T, L):
    io = 2 * bb * (R + S) * T * 4                     # double-buffered I/O blocks
    w = 2 * L * (2 * 2 * R * R + (R + S) * R) * 4     # packed weights (x2, safe)
    tmp = bb * (8 * R + 4 * S) * T * 4                # f32 temporaries (rough)
    return io + w + tmp


def _pick_batch_block(N, R, S, T, L, budget, prefer_multi):
    divs = [b for b in range(1, N + 1) if N % b == 0]
    fit = [b for b in divs if _per_step_vmem_bytes(b, R, S, T, L) <= budget] or [1]
    if prefer_multi and N >= 2:
        multi = [b for b in fit if N // b >= 2]
        if multi:
            return max(multi)
    return max(fit)


def residual_stack(x, wf, wg, wres, wskip, dilations, *,
                   compute_dtype=None, batch_block=None):
    """x:     (N, R, T) float32  — PyTorch Conv1d NCT layout (no transposes).
       wf,wg: (L, R, R, 2)       — Conv1d weights (out, in, tap); tap 0 hits
                                   x[t-d], tap 1 hits x[t].
       wres:  (L, R, R), wskip: (L, S, R) — 1x1 conv weights (out, in).
       Returns the summed skip connections, shape (N, S, T)."""
    N, R, T = x.shape
    L = wf.shape[0]
    S = wskip.shape[1]
    dils = tuple(int(d) for d in dilations)
    assert len(dils) == L

    if compute_dtype is None:
        compute_dtype = _default_compute_dtype()

    # --- pack + cast weights ONCE (tap-split: no in-kernel concatenate) ------
    w0 = jnp.concatenate([wf[..., 0], wg[..., 0]], axis=1).astype(compute_dtype)  # (L,2R,R)
    w1 = jnp.concatenate([wf[..., 1], wg[..., 1]], axis=1).astype(compute_dtype)  # (L,2R,R)
    wrs = jnp.concatenate([wres, wskip], axis=1).astype(compute_dtype)            # (L,R+S,R)

    # --- generation-aware VMEM budget & grid shape ----------------------------
    vmem_cap = _vmem_capacity_bytes()
    budget = (vmem_cap * 5) // 8        # ~80 MiB on 128 MiB chips, ~40 MiB on v7x
    prefer_multi = _prefer_multi_step()
    if batch_block is None:
        batch_block = _pick_batch_block(N, R, S, T, L, budget, prefer_multi)
    if N % batch_block != 0:
        batch_block = max(b for b in range(1, batch_block + 1) if N % b == 0)
    n_blocks = N // batch_block

    est = _per_step_vmem_bytes(batch_block, R, S, T, L)
    vmem_limit = int(min(max(budget, est + (4 << 20)), vmem_cap - (8 << 20)))

    kernel = functools.partial(
        residual_stack_kernel, dilations=dils, res_ch=R,
        compute_dtype=compute_dtype)

    skip = pl.pallas_call(
        kernel,
        out_shape=jax.ShapeDtypeStruct((N, S, T), x.dtype),
        grid_spec=pltpu.PrefetchScalarGridSpec(
            num_scalar_prefetch=0,
            grid=(n_blocks,),
            in_specs=[
                pl.BlockSpec((batch_block, R, T), lambda n: (n, 0, 0)),
                pl.BlockSpec((L, 2 * R, R), lambda n: (0, 0, 0)),
                pl.BlockSpec((L, 2 * R, R), lambda n: (0, 0, 0)),
                pl.BlockSpec((L, R + S, R), lambda n: (0, 0, 0)),
            ],
            out_specs=pl.BlockSpec((batch_block, S, T), lambda n: (n, 0, 0)),
        ),
        compiler_params=pltpu.CompilerParams(
            dimension_semantics=("parallel",),
            vmem_limit_bytes=vmem_limit),
    )(x, w0, w1, wrs)

    return skip   # (N, S, T)


def reference(x, wf, wg, wres, wskip, dilations):
    """Pure-JAX reference matching the PyTorch ResidualStack forward (NCT)."""
    N, R, T = x.shape
    out = x
    skip_sum = 0.0
    t = jnp.arange(T)[None, None, :]
    for l, d in enumerate(dilations):
        x_shift = jnp.pad(out, ((0, 0), (0, 0), (d, 0)))[:, :, :T]
        f = (jnp.einsum('oi,nit->not', wf[l, :, :, 0], x_shift)
             + jnp.einsum('oi,nit->not', wf[l, :, :, 1], out))
        g = (jnp.einsum('oi,nit->not', wg[l, :, :, 0], x_shift)
             + jnp.einsum('oi,nit->not', wg[l, :, :, 1], out))
        # F.pad((d,0)) of the conv outputs => gated activation is 0 for t < d.
        z = jnp.where(t >= d, jnp.tanh(f) * jax.nn.sigmoid(g), 0.0)
        res = jnp.einsum('oi,nit->not', wres[l], z)
        skip = jnp.einsum('oi,nit->not', wskip[l], z)
        out = out + res
        skip_sum = skip_sum + skip
    return skip_sum


if __name__ == "__main__":
    key = jax.random.PRNGKey(0)

    # Small shapes consistent with the module.
    N, T = 2, 128          # batch, sequence length
    R, S = 16, 32          # res_channels, skip_channels
    num_dilation_loops, dilation_limit = 2, 3
    dilations = tuple(2 ** i
                      for _ in range(num_dilation_loops)
                      for i in range(dilation_limit))   # (1, 2, 4, 1, 2, 4)
    L = len(dilations)

    ks = jax.random.split(key, 5)
    # Input in PyTorch Conv1d layout (N, C, T); weights in Conv1d (out,in,k).
    x = jax.random.normal(ks[0], (N, R, T), jnp.float32)
    wf = jax.random.normal(ks[1], (L, R, R, 2), jnp.float32) * 0.2
    wg = jax.random.normal(ks[2], (L, R, R, 2), jnp.float32) * 0.2
    wres = jax.random.normal(ks[3], (L, R, R), jnp.float32) * 0.2
    wskip = jax.random.normal(ks[4], (L, S, R), jnp.float32) * 0.2

    ref = reference(x, wf, wg, wres, wskip, dilations)

    # f32 MXU feed: tight check against the pure-JAX reference.
    out = jax.block_until_ready(
        residual_stack(x, wf, wg, wres, wskip, dilations,
                       compute_dtype=jnp.float32))
    assert out.shape == (N, S, T)
    err = float(jnp.max(jnp.abs(out - ref)))
    assert jnp.allclose(out, ref, atol=1e-4, rtol=1e-4), err

    # bf16 feed (v6e / v7x fast path), f32 accumulation: looser tolerance.
    out_bf16 = jax.block_until_ready(
        residual_stack(x, wf, wg, wres, wskip, dilations,
                       compute_dtype=jnp.bfloat16))
    err_bf16 = float(jnp.max(jnp.abs(out_bf16 - ref)))
    assert jnp.allclose(out_bf16, ref, atol=2e-1, rtol=5e-2), err_bf16

    # Generation-aware default path just needs to run cleanly.
    out_auto = jax.block_until_ready(
        residual_stack(x, wf, wg, wres, wskip, dilations))
    assert out_auto.shape == (N, S, T)

    print("KERNEL_OK")
</pallas_src>

<mosaic_0001>
module attributes {stable_mosaic.version = 11 : i64} {
  func.func @residual_stack_kernel(%arg0: i32, %arg1: memref<1x16x128xf32, #tpu.memory_space<vmem>>, %arg2: memref<6x32x16xf32, #tpu.memory_space<vmem>>, %arg3: memref<6x32x16xf32, #tpu.memory_space<vmem>>, %arg4: memref<6x48x16xf32, #tpu.memory_space<vmem>>, %arg5: memref<1x32x128xf32, #tpu.memory_space<vmem>>) attributes {dimension_semantics = [#tpu.dimension_semantics<parallel>], iteration_bounds = array<i64: 2>, scalar_prefetch = 0 : i64, scratch_operands = 0 : i64, tpu.core_type = #tpu.core_type<tc>, window_params = [{transform_indices = @transform_0, window_bounds = array<i64: 1, 16, 128>}, {pipeline_mode = #tpu.pipeline_mode<synchronous>, transform_indices = @transform_1, window_bounds = array<i64: 6, 32, 16>}, {pipeline_mode = #tpu.pipeline_mode<synchronous>, transform_indices = @transform_2, window_bounds = array<i64: 6, 32, 16>}, {pipeline_mode = #tpu.pipeline_mode<synchronous>, transform_indices = @transform_3, window_bounds = array<i64: 6, 48, 16>}, {transform_indices = @transform_4, window_bounds = array<i64: 1, 32, 128>}]} {
    %0 = tpu.iota {dimensions = array<i32: 1>} : vector<1x128xi32>
    %c1_i32 = arith.constant 1 : i32
    %1 = vector.broadcast %c1_i32 : i32 to vector<1x128xi32>
    %2 = arith.cmpi sge, %0, %1 : vector<1x128xi32>
    %c2_i32 = arith.constant 2 : i32
    %3 = vector.broadcast %c2_i32 : i32 to vector<1x128xi32>
    %4 = arith.cmpi sge, %0, %3 : vector<1x128xi32>
    %c4_i32 = arith.constant 4 : i32
    %5 = vector.broadcast %c4_i32 : i32 to vector<1x128xi32>
    %6 = arith.cmpi sge, %0, %5 : vector<1x128xi32>
    %c0 = arith.constant 0 : index
    %c0_0 = arith.constant 0 : index
    %c0_1 = arith.constant 0 : index
    %7 = vector.load %arg1[%c0, %c0_0, %c0_1] : memref<1x16x128xf32, #tpu.memory_space<vmem>>, vector<1x16x128xf32>
    %8 = vector.shape_cast %7 : vector<1x16x128xf32> to vector<16x128xf32>
    %cst = arith.constant 0.000000e+00 : f32
    %9 = vector.broadcast %cst : f32 to vector<32x128xf32>
    %c0_2 = arith.constant 0 : index
    %c0_3 = arith.constant 0 : index
    %c0_4 = arith.constant 0 : index
    %10 = vector.load %arg2[%c0_2, %c0_3, %c0_4] : memref<6x32x16xf32, #tpu.memory_space<vmem>>, vector<1x32x16xf32>
    %11 = vector.shape_cast %10 : vector<1x32x16xf32> to vector<32x16xf32>
    %c0_5 = arith.constant 0 : index
    %c0_6 = arith.constant 0 : index
    %c0_7 = arith.constant 0 : index
    %12 = vector.load %arg3[%c0_5, %c0_6, %c0_7] : memref<6x32x16xf32, #tpu.memory_space<vmem>>, vector<1x32x16xf32>
    %13 = vector.shape_cast %12 : vector<1x32x16xf32> to vector<32x16xf32>
    %c0_8 = arith.constant 0 : index
    %c0_9 = arith.constant 0 : index
    %c0_10 = arith.constant 0 : index
    %14 = vector.load %arg4[%c0_8, %c0_9, %c0_10] : memref<6x48x16xf32, #tpu.memory_space<vmem>>, vector<1x48x16xf32>
    %15 = vector.shape_cast %14 : vector<1x48x16xf32> to vector<48x16xf32>
    %c1_i32_11 = arith.constant 1 : i32
    %16 = tpu.dynamic_rotate %8 by %c1_i32_11 dim 1 : vector<16x128xf32>, i32 -> vector<16x128xf32>
    %cst_12 = arith.constant dense<0.000000e+00> : vector<32x128xf32>
    %17 = tpu.matmul %11, %16, %cst_12 {dimension_numbers = #tpu.dot_dimension_numbers<[1], [0], [0], [1], [0, 0, 1, 1], [], []>} : vector<32x16xf32>, vector<16x128xf32>, vector<32x128xf32> -> vector<32x128xf32>
    %cst_13 = arith.constant dense<0.000000e+00> : vector<32x128xf32>
    %18 = tpu.matmul %13, %8, %cst_13 {dimension_numbers = #tpu.dot_dimension_numbers<[1], [0], [0], [1], [0, 0, 1, 1], [], []>} : vector<32x16xf32>, vector<16x128xf32>, vector<32x128xf32> -> vector<32x128xf32>
    %19 = arith.addf %17, %18 : vector<32x128xf32>
    %20 = vector.extract_strided_slice %19 {offsets = [0, 0], sizes = [16, 128], strides = [1, 1]} : vector<32x128xf32> to vector<16x128xf32>
    %21 = vector.extract_strided_slice %19 {offsets = [16, 0], sizes = [16, 128], strides = [1, 1]} : vector<32x128xf32> to vector<16x128xf32>
    %22 = math.tanh %20 : vector<16x128xf32>
    %23 = arith.negf %21 : vector<16x128xf32>
    %24 = math.exp %23 : vector<16x128xf32>
    %cst_14 = arith.constant 1.000000e+00 : f32
    %25 = vector.broadcast %cst_14 : f32 to vector<16x128xf32>
    %26 = arith.addf %25, %24 : vector<16x128xf32>
    %27 = arith.divf %25, %26 : vector<16x128xf32>
    %28 = arith.mulf %22, %27 : vector<16x128xf32>
    %cst_15 = arith.constant 0.000000e+00 : f32
    %29 = vector.shape_cast %2 : vector<1x128xi1> to vector<1x128xi1>
    %30 = vector.broadcast %29 : vector<1x128xi1> to vector<16x128xi1>
    %31 = vector.broadcast %cst_15 : f32 to vector<16x128xf32>
    %32 = arith.select %30, %28, %31 : vector<16x128xi1>, vector<16x128xf32>
    %cst_16 = arith.constant dense<0.000000e+00> : vector<48x128xf32>
    %33 = tpu.matmul %15, %32, %cst_16 {dimension_numbers = #tpu.dot_dimension_numbers<[1], [0], [0], [1], [0, 0, 1, 1], [], []>} : vector<48x16xf32>, vector<16x128xf32>, vector<48x128xf32> -> vector<48x128xf32>
    %34 = vector.extract_strided_slice %33 {offsets = [0, 0], sizes = [16, 128], strides = [1, 1]} : vector<48x128xf32> to vector<16x128xf32>
    %35 = arith.addf %8, %34 : vector<16x128xf32>
    %36 = vector.extract_strided_slice %33 {offsets = [16, 0], sizes = [32, 128], strides = [1, 1]} : vector<48x128xf32> to vector<32x128xf32>
    %37 = arith.addf %9, %36 : vector<32x128xf32>
    %c1 = arith.constant 1 : index
    %c0_17 = arith.constant 0 : index
    %c0_18 = arith.constant 0 : index
    %38 = vector.load %arg2[%c1, %c0_17, %c0_18] : memref<6x32x16xf32, #tpu.memory_space<vmem>>, vector<1x32x16xf32>
    %39 = vector.shape_cast %38 : vector<1x32x16xf32> to vector<32x16xf32>
    %c1_19 = arith.constant 1 : index
    %c0_20 = arith.constant 0 : index
    %c0_21 = arith.constant 0 : index
    %40 = vector.load %arg3[%c1_19, %c0_20, %c0_21] : memref<6x32x16xf32, #tpu.memory_space<vmem>>, vector<1x32x16xf32>
    %41 = vector.shape_cast %40 : vector<1x32x16xf32> to vector<32x16xf32>
    %c1_22 = arith.constant 1 : index
    %c0_23 = arith.constant 0 : index
    %c0_24 = arith.constant 0 : index
    %42 = vector.load %arg4[%c1_22, %c0_23, %c0_24] : memref<6x48x16xf32, #tpu.memory_space<vmem>>, vector<1x48x16xf32>
    %43 = vector.shape_cast %42 : vector<1x48x16xf32> to vector<48x16xf32>
    %c2_i32_25 = arith.constant 2 : i32
    %44 = tpu.dynamic_rotate %35 by %c2_i32_25 dim 1 : vector<16x128xf32>, i32 -> vector<16x128xf32>
    %cst_26 = arith.constant dense<0.000000e+00> : vector<32x128xf32>
    %45 = tpu.matmul %39, %44, %cst_26 {dimension_numbers = #tpu.dot_dimension_numbers<[1], [0], [0], [1], [0, 0, 1, 1], [], []>} : vector<32x16xf32>, vector<16x128xf32>, vector<32x128xf32> -> vector<32x128xf32>
    %cst_27 = arith.constant dense<0.000000e+00> : vector<32x128xf32>
    %46 = tpu.matmul %41, %35, %cst_27 {dimension_numbers = #tpu.dot_dimension_numbers<[1], [0], [0], [1], [0, 0, 1, 1], [], []>} : vector<32x16xf32>, vector<16x128xf32>, vector<32x128xf32> -> vector<32x128xf32>
    %47 = arith.addf %45, %46 : vector<32x128xf32>
    %48 = vector.extract_strided_slice %47 {offsets = [0, 0], sizes = [16, 128], strides = [1, 1]} : vector<32x128xf32> to vector<16x128xf32>
    %49 = vector.extract_strided_slice %47 {offsets = [16, 0], sizes = [16, 128], strides = [1, 1]} : vector<32x128xf32> to vector<16x128xf32>
    %50 = math.tanh %48 : vector<16x128xf32>
    %51 = arith.negf %49 : vector<16x128xf32>
    %52 = math.exp %51 : vector<16x128xf32>
    %cst_28 = arith.constant 1.000000e+00 : f32
    %53 = vector.broadcast %cst_28 : f32 to vector<16x128xf32>
    %54 = arith.addf %53, %52 : vector<16x128xf32>
    %55 = arith.divf %53, %54 : vector<16x128xf32>
    %56 = arith.mulf %50, %55 : vector<16x128xf32>
    %cst_29 = arith.constant 0.000000e+00 : f32
    %57 = vector.shape_cast %4 : vector<1x128xi1> to vector<1x128xi1>
    %58 = vector.broadcast %57 : vector<1x128xi1> to vector<16x128xi1>
    %59 = vector.broadcast %cst_29 : f32 to vector<16x128xf32>
    %60 = arith.select %58, %56, %59 : vector<16x128xi1>, vector<16x128xf32>
    %cst_30 = arith.constant dense<0.000000e+00> : vector<48x128xf32>
    %61 = tpu.matmul %43, %60, %cst_30 {dimension_numbers = #tpu.dot_dimension_numbers<[1], [0], [0], [1], [0, 0, 1, 1], [], []>} : vector<48x16xf32>, vector<16x128xf32>, vector<48x128xf32> -> vector<48x128xf32>
    %62 = vector.extract_strided_slice %61 {offsets = [0, 0], sizes = [16, 128], strides = [1, 1]} : vector<48x128xf32> to vector<16x128xf32>
    %63 = arith.addf %35, %62 : vector<16x128xf32>
    %64 = vector.extract_strided_slice %61 {offsets = [16, 0], sizes = [32, 128], strides = [1, 1]} : vector<48x128xf32> to vector<32x128xf32>
    %65 = arith.addf %37, %64 : vector<32x128xf32>
    %c2 = arith.constant 2 : index
    %c0_31 = arith.constant 0 : index
    %c0_32 = arith.constant 0 : index
    %66 = vector.load %arg2[%c2, %c0_31, %c0_32] : memref<6x32x16xf32, #tpu.memory_space<vmem>>, vector<1x32x16xf32>
    %67 = vector.shape_cast %66 : vector<1x32x16xf32> to vector<32x16xf32>
    %c2_33 = arith.constant 2 : index
    %c0_34 = arith.constant 0 : index
    %c0_35 = arith.constant 0 : index
    %68 = vector.load %arg3[%c2_33, %c0_34, %c0_35] : memref<6x32x16xf32, #tpu.memory_space<vmem>>, vector<1x32x16xf32>
    %69 = vector.shape_cast %68 : vector<1x32x16xf32> to vector<32x16xf32>
    %c2_36 = arith.constant 2 : index
    %c0_37 = arith.constant 0 : index
    %c0_38 = arith.constant 0 : index
    %70 = vector.load %arg4[%c2_36, %c0_37, %c0_38] : memref<6x48x16xf32, #tpu.memory_space<vmem>>, vector<1x48x16xf32>
    %71 = vector.shape_cast %70 : vector<1x48x16xf32> to vector<48x16xf32>
    %c4_i32_39 = arith.constant 4 : i32
    %72 = tpu.dynamic_rotate %63 by %c4_i32_39 dim 1 : vector<16x128xf32>, i32 -> vector<16x128xf32>
    %cst_40 = arith.constant dense<0.000000e+00> : vector<32x128xf32>
    %73 = tpu.matmul %67, %72, %cst_40 {dimension_numbers = #tpu.dot_dimension_numbers<[1], [0], [0], [1], [0, 0, 1, 1], [], []>} : vector<32x16xf32>, vector<16x128xf32>, vector<32x128xf32> -> vector<32x128xf32>
    %cst_41 = arith.constant dense<0.000000e+00> : vector<32x128xf32>
    %74 = tpu.matmul %69, %63, %cst_41 {dimension_numbers = #tpu.dot_dimension_numbers<[1], [0], [0], [1], [0, 0, 1, 1], [], []>} : vector<32x16xf32>, vector<16x128xf32>, vector<32x128xf32> -> vector<32x128xf32>
    %75 = arith.addf %73, %74 : vector<32x128xf32>
    %76 = vector.extract_strided_slice %75 {offsets = [0, 0], sizes = [16, 128], strides = [1, 1]} : vector<32x128xf32> to vector<16x128xf32>
    %77 = vector.extract_strided_slice %75 {offsets = [16, 0], sizes = [16, 128], strides = [1, 1]} : vector<32x128xf32> to vector<16x128xf32>
    %78 = math.tanh %76 : vector<16x128xf32>
    %79 = arith.negf %77 : vector<16x128xf32>
    %80 = math.exp %79 : vector<16x128xf32>
    %cst_42 = arith.constant 1.000000e+00 : f32
    %81 = vector.broadcast %cst_42 : f32 to vector<16x128xf32>
    %82 = arith.addf %81, %80 : vector<16x128xf32>
    %83 = arith.divf %81, %82 : vector<16x128xf32>
    %84 = arith.mulf %78, %83 : vector<16x128xf32>
    %cst_43 = arith.constant 0.000000e+00 : f32
    %85 = vector.shape_cast %6 : vector<1x128xi1> to vector<1x128xi1>
    %86 = vector.broadcast %85 : vector<1x128xi1> to vector<16x128xi1>
    %87 = vector.broadcast %cst_43 : f32 to vector<16x128xf32>
    %88 = arith.select %86, %84, %87 : vector<16x128xi1>, vector<16x128xf32>
    %cst_44 = arith.constant dense<0.000000e+00> : vector<48x128xf32>
    %89 = tpu.matmul %71, %88, %cst_44 {dimension_numbers = #tpu.dot_dimension_numbers<[1], [0], [0], [1], [0, 0, 1, 1], [], []>} : vector<48x16xf32>, vector<16x128xf32>, vector<48x128xf32> -> vector<48x128xf32>
    %90 = vector.extract_strided_slice %89 {offsets = [0, 0], sizes = [16, 128], strides = [1, 1]} : vector<48x128xf32> to vector<16x128xf32>
    %91 = arith.addf %63, %90 : vector<16x128xf32>
    %92 = vector.extract_strided_slice %89 {offsets = [16, 0], sizes = [32, 128], strides = [1, 1]} : vector<48x128xf32> to vector<32x128xf32>
    %93 = arith.addf %65, %92 : vector<32x128xf32>
    %c3 = arith.constant 3 : index
    %c0_45 = arith.constant 0 : index
    %c0_46 = arith.constant 0 : index
    %94 = vector.load %arg2[%c3, %c0_45, %c0_46] : memref<6x32x16xf32, #tpu.memory_space<vmem>>, vector<1x32x16xf32>
    %95 = vector.shape_cast %94 : vector<1x32x16xf32> to vector<32x16xf32>
    %c3_47 = arith.constant 3 : index
    %c0_48 = arith.constant 0 : index
    %c0_49 = arith.constant 0 : index
    %96 = vector.load %arg3[%c3_47, %c0_48, %c0_49] : memref<6x32x16xf32, #tpu.memory_space<vmem>>, vector<1x32x16xf32>
    %97 = vector.shape_cast %96 : vector<1x32x16xf32> to vector<32x16xf32>
    %c3_50 = arith.constant 3 : index
    %c0_51 = arith.constant 0 : index
    %c0_52 = arith.constant 0 : index
    %98 = vector.load %arg4[%c3_50, %c0_51, %c0_52] : memref<6x48x16xf32, #tpu.memory_space<vmem>>, vector<1x48x16xf32>
    %99 = vector.shape_cast %98 : vector<1x48x16xf32> to vector<48x16xf32>
    %c1_i32_53 = arith.constant 1 : i32
    %100 = tpu.dynamic_rotate %91 by %c1_i32_53 dim 1 : vector<16x128xf32>, i32 -> vector<16x128xf32>
    %cst_54 = arith.constant dense<0.000000e+00> : vector<32x128xf32>
    %101 = tpu.matmul %95, %100, %cst_54 {dimension_numbers = #tpu.dot_dimension_numbers<[1], [0], [0], [1], [0, 0, 1, 1], [], []>} : vector<32x16xf32>, vector<16x128xf32>, vector<32x128xf32> -> vector<32x128xf32>
    %cst_55 = arith.constant dense<0.000000e+00> : vector<32x128xf32>
    %102 = tpu.matmul %97, %91, %cst_55 {dimension_numbers = #tpu.dot_dimension_numbers<[1], [0], [0], [1], [0, 0, 1, 1], [], []>} : vector<32x16xf32>, vector<16x128xf32>, vector<32x128xf32> -> vector<32x128xf32>
    %103 = arith.addf %101, %102 : vector<32x128xf32>
    %104 = vector.extract_strided_slice %103 {offsets = [0, 0], sizes = [16, 128], strides = [1, 1]} : vector<32x128xf32> to vector<16x128xf32>
    %105 = vector.extract_strided_slice %103 {offsets = [16, 0], sizes = [16, 128], strides = [1, 1]} : vector<32x128xf32> to vector<16x128xf32>
    %106 = math.tanh %104 : vector<16x128xf32>
    %107 = arith.negf %105 : vector<16x128xf32>
    %108 = math.exp %107 : vector<16x128xf32>
    %cst_56 = arith.constant 1.000000e+00 : f32
    %109 = vector.broadcast %cst_56 : f32 to vector<16x128xf32>
    %110 = arith.addf %109, %108 : vector<16x128xf32>
    %111 = arith.divf %109, %110 : vector<16x128xf32>
    %112 = arith.mulf %106, %111 : vector<16x128xf32>
    %cst_57 = arith.constant 0.000000e+00 : f32
    %113 = vector.shape_cast %2 : vector<1x128xi1> to vector<1x128xi1>
    %114 = vector.broadcast %113 : vector<1x128xi1> to vector<16x128xi1>
    %115 = vector.broadcast %cst_57 : f32 to vector<16x128xf32>
    %116 = arith.select %114, %112, %115 : vector<16x128xi1>, vector<16x128xf32>
    %cst_58 = arith.constant dense<0.000000e+00> : vector<48x128xf32>
    %117 = tpu.matmul %99, %116, %cst_58 {dimension_numbers = #tpu.dot_dimension_numbers<[1], [0], [0], [1], [0, 0, 1, 1], [], []>} : vector<48x16xf32>, vector<16x128xf32>, vector<48x128xf32> -> vector<48x128xf32>
    %118 = vector.extract_strided_slice %117 {offsets = [0, 0], sizes = [16, 128], strides = [1, 1]} : vector<48x128xf32> to vector<16x128xf32>
    %119 = arith.addf %91, %118 : vector<16x128xf32>
    %120 = vector.extract_strided_slice %117 {offsets = [16, 0], sizes = [32, 128], strides = [1, 1]} : vector<48x128xf32> to vector<32x128xf32>
    %121 = arith.addf %93, %120 : vector<32x128xf32>
    %c4 = arith.constant 4 : index
    %c0_59 = arith.constant 0 : index
    %c0_60 = arith.constant 0 : index
    %122 = vector.load %arg2[%c4, %c0_59, %c0_60] : memref<6x32x16xf32, #tpu.memory_space<vmem>>, vector<1x32x16xf32>
    %123 = vector.shape_cast %122 : vector<1x32x16xf32> to vector<32x16xf32>
    %c4_61 = arith.constant 4 : index
    %c0_62 = arith.constant 0 : index
    %c0_63 = arith.constant 0 : index
    %124 = vector.load %arg3[%c4_61, %c0_62, %c0_63] : memref<6x32x16xf32, #tpu.memory_space<vmem>>, vector<1x32x16xf32>
    %125 = vector.shape_cast %124 : vector<1x32x16xf32> to vector<32x16xf32>
    %c4_64 = arith.constant 4 : index
    %c0_65 = arith.constant 0 : index
    %c0_66 = arith.constant 0 : index
    %126 = vector.load %arg4[%c4_64, %c0_65, %c0_66] : memref<6x48x16xf32, #tpu.memory_space<vmem>>, vector<1x48x16xf32>
    %127 = vector.shape_cast %126 : vector<1x48x16xf32> to vector<48x16xf32>
    %c2_i32_67 = arith.constant 2 : i32
    %128 = tpu.dynamic_rotate %119 by %c2_i32_67 dim 1 : vector<16x128xf32>, i32 -> vector<16x128xf32>
    %cst_68 = arith.constant dense<0.000000e+00> : vector<32x128xf32>
    %129 = tpu.matmul %123, %128, %cst_68 {dimension_numbers = #tpu.dot_dimension_numbers<[1], [0], [0], [1], [0, 0, 1, 1], [], []>} : vector<32x16xf32>, vector<16x128xf32>, vector<32x128xf32> -> vector<32x128xf32>
    %cst_69 = arith.constant dense<0.000000e+00> : vector<32x128xf32>
    %130 = tpu.matmul %125, %119, %cst_69 {dimension_numbers = #tpu.dot_dimension_numbers<[1], [0], [0], [1], [0, 0, 1, 1], [], []>} : vector<32x16xf32>, vector<16x128xf32>, vector<32x128xf32> -> vector<32x128xf32>
    %131 = arith.addf %129, %130 : vector<32x128xf32>
    %132 = vector.extract_strided_slice %131 {offsets = [0, 0], sizes = [16, 128], strides = [1, 1]} : vector<32x128xf32> to vector<16x128xf32>
    %133 = vector.extract_strided_slice %131 {offsets = [16, 0], sizes = [16, 128], strides = [1, 1]} : vector<32x128xf32> to vector<16x128xf32>
    %134 = math.tanh %132 : vector<16x128xf32>
    %135 = arith.negf %133 : vector<16x128xf32>
    %136 = math.exp %135 : vector<16x128xf32>
    %cst_70 = arith.constant 1.000000e+00 : f32
    %137 = vector.broadcast %cst_70 : f32 to vector<16x128xf32>
    %138 = arith.addf %137, %136 : vector<16x128xf32>
    %139 = arith.divf %137, %138 : vector<16x128xf32>
    %140 = arith.mulf %134, %139 : vector<16x128xf32>
    %cst_71 = arith.constant 0.000000e+00 : f32
    %141 = vector.shape_cast %4 : vector<1x128xi1> to vector<1x128xi1>
    %142 = vector.broadcast %141 : vector<1x128xi1> to vector<16x128xi1>
    %143 = vector.broadcast %cst_71 : f32 to vector<16x128xf32>
    %144 = arith.select %142, %140, %143 : vector<16x128xi1>, vector<16x128xf32>
    %cst_72 = arith.constant dense<0.000000e+00> : vector<48x128xf32>
    %145 = tpu.matmul %127, %144, %cst_72 {dimension_numbers = #tpu.dot_dimension_numbers<[1], [0], [0], [1], [0, 0, 1, 1], [], []>} : vector<48x16xf32>, vector<16x128xf32>, vector<48x128xf32> -> vector<48x128xf32>
    %146 = vector.extract_strided_slice %145 {offsets = [0, 0], sizes = [16, 128], strides = [1, 1]} : vector<48x128xf32> to vector<16x128xf32>
    %147 = arith.addf %119, %146 : vector<16x128xf32>
    %148 = vector.extract_strided_slice %145 {offsets = [16, 0], sizes = [32, 128], strides = [1, 1]} : vector<48x128xf32> to vector<32x128xf32>
    %149 = arith.addf %121, %148 : vector<32x128xf32>
    %c5 = arith.constant 5 : index
    %c0_73 = arith.constant 0 : index
    %c0_74 = arith.constant 0 : index
    %150 = vector.load %arg2[%c5, %c0_73, %c0_74] : memref<6x32x16xf32, #tpu.memory_space<vmem>>, vector<1x32x16xf32>
    %151 = vector.shape_cast %150 : vector<1x32x16xf32> to vector<32x16xf32>
    %c5_75 = arith.constant 5 : index
    %c0_76 = arith.constant 0 : index
    %c0_77 = arith.constant 0 : index
    %152 = vector.load %arg3[%c5_75, %c0_76, %c0_77] : memref<6x32x16xf32, #tpu.memory_space<vmem>>, vector<1x32x16xf32>
    %153 = vector.shape_cast %152 : vector<1x32x16xf32> to vector<32x16xf32>
    %c5_78 = arith.constant 5 : index
    %c0_79 = arith.constant 0 : index
    %c0_80 = arith.constant 0 : index
    %154 = vector.load %arg4[%c5_78, %c0_79, %c0_80] : memref<6x48x16xf32, #tpu.memory_space<vmem>>, vector<1x48x16xf32>
    %155 = vector.shape_cast %154 : vector<1x48x16xf32> to vector<48x16xf32>
    %c4_i32_81 = arith.constant 4 : i32
    %156 = tpu.dynamic_rotate %147 by %c4_i32_81 dim 1 : vector<16x128xf32>, i32 -> vector<16x128xf32>
    %cst_82 = arith.constant dense<0.000000e+00> : vector<32x128xf32>
    %157 = tpu.matmul %151, %156, %cst_82 {dimension_numbers = #tpu.dot_dimension_numbers<[1], [0], [0], [1], [0, 0, 1, 1], [], []>} : vector<32x16xf32>, vector<16x128xf32>, vector<32x128xf32> -> vector<32x128xf32>
    %cst_83 = arith.constant dense<0.000000e+00> : vector<32x128xf32>
    %158 = tpu.matmul %153, %147, %cst_83 {dimension_numbers = #tpu.dot_dimension_numbers<[1], [0], [0], [1], [0, 0, 1, 1], [], []>} : vector<32x16xf32>, vector<16x128xf32>, vector<32x128xf32> -> vector<32x128xf32>
    %159 = arith.addf %157, %158 : vector<32x128xf32>
    %160 = vector.extract_strided_slice %159 {offsets = [0, 0], sizes = [16, 128], strides = [1, 1]} : vector<32x128xf32> to vector<16x128xf32>
    %161 = vector.extract_strided_slice %159 {offsets = [16, 0], sizes = [16, 128], strides = [1, 1]} : vector<32x128xf32> to vector<16x128xf32>
    %162 = math.tanh %160 : vector<16x128xf32>
    %163 = arith.negf %161 : vector<16x128xf32>
    %164 = math.exp %163 : vector<16x128xf32>
    %cst_84 = arith.constant 1.000000e+00 : f32
    %165 = vector.broadcast %cst_84 : f32 to vector<16x128xf32>
    %166 = arith.addf %165, %164 : vector<16x128xf32>
    %167 = arith.divf %165, %166 : vector<16x128xf32>
    %168 = arith.mulf %162, %167 : vector<16x128xf32>
    %cst_85 = arith.constant 0.000000e+00 : f32
    %169 = vector.shape_cast %6 : vector<1x128xi1> to vector<1x128xi1>
    %170 = vector.broadcast %169 : vector<1x128xi1> to vector<16x128xi1>
    %171 = vector.broadcast %cst_85 : f32 to vector<16x128xf32>
    %172 = arith.select %170, %168, %171 : vector<16x128xi1>, vector<16x128xf32>
    %cst_86 = arith.constant dense<0.000000e+00> : vector<48x128xf32>
    %173 = tpu.matmul %155, %172, %cst_86 {dimension_numbers = #tpu.dot_dimension_numbers<[1], [0], [0], [1], [0, 0, 1, 1], [], []>} : vector<48x16xf32>, vector<16x128xf32>, vector<48x128xf32> -> vector<48x128xf32>
    %174 = vector.extract_strided_slice %173 {offsets = [16, 0], sizes = [32, 128], strides = [1, 1]} : vector<48x128xf32> to vector<32x128xf32>
    %175 = arith.addf %149, %174 : vector<32x128xf32>
    %c0_87 = arith.constant 0 : index
    %c0_88 = arith.constant 0 : index
    %c0_89 = arith.constant 0 : index
    %176 = vector.load %arg5[%c0_87, %c0_88, %c0_89] : memref<1x32x128xf32, #tpu.memory_space<vmem>>, vector<1x32x128xf32>
    %177 = vector.shape_cast %176 : vector<1x32x128xf32> to vector<32x128xf32>
    %178 = vector.shape_cast %175 : vector<32x128xf32> to vector<1x32x128xf32>
    tpu.vector_store %arg5[%c0_87, %c0_88, %c0_89], %178 {strides = array<i32>} : memref<1x32x128xf32, #tpu.memory_space<vmem>>, vector<1x32x128xf32>,
    return
  }
  func.func @transform_0(%arg0: i32) -> (i32, i32, i32) {
    %c0_i32 = arith.constant 0 : i32
    %c0_i32_0 = arith.constant 0 : i32
    %c0_i32_1 = arith.constant 0 : i32
    return %arg0, %c0_i32, %c0_i32_0 : i32, i32, i32
  }
  func.func @transform_1(%arg0: i32) -> (i32, i32, i32) {
    %c0_i32 = arith.constant 0 : i32
    %c0_i32_0 = arith.constant 0 : i32
    %c0_i32_1 = arith.constant 0 : i32
    %c0_i32_2 = arith.constant 0 : i32
    return %c0_i32, %c0_i32_0, %c0_i32_1 : i32, i32, i32
  }
  func.func @transform_2(%arg0: i32) -> (i32, i32, i32) {
    %c0_i32 = arith.constant 0 : i32
    %c0_i32_0 = arith.constant 0 : i32
    %c0_i32_1 = arith.constant 0 : i32
    %c0_i32_2 = arith.constant 0 : i32
    return %c0_i32, %c0_i32_0, %c0_i32_1 : i32, i32, i32
  }
  func.func @transform_3(%arg0: i32) -> (i32, i32, i32) {
    %c0_i32 = arith.constant 0 : i32
    %c0_i32_0 = arith.constant 0 : i32
    %c0_i32_1 = arith.constant 0 : i32
    %c0_i32_2 = arith.constant 0 : i32
    return %c0_i32, %c0_i32_0, %c0_i32_1 : i32, i32, i32
  }
  func.func @transform_4(%arg0: i32) -> (i32, i32, i32) {
    %c0_i32 = arith.constant 0 : i32
    %c0_i32_0 = arith.constant 0 : i32
    %c0_i32_1 = arith.constant 0 : i32
    return %arg0, %c0_i32, %c0_i32_0 : i32, i32, i32
  }
}

</mosaic_0001>

<bundles_post_ra>
// kernel: tpu_custom_call.1
= control target key start
LH: loop header
LB: loop body
LE: loop exit
PB: predicated region body
PF: predicated region fallthrough
CT: control target
= control target key end

     0   :  { %9 = vsyncpa [#allocation3], 0  ;;  %s3736_s0 = inlined_call_operand.vmem [shape: f32[2,16,128], index: 0, kind: input, shape index: {}]   ;;  %s3737_s1 = inlined_call_operand.vmem [shape: f32[6,32,16], index: 1, kind: input, shape index: {}]   ;;  %s3738_s2 = inlined_call_operand.vmem [shape: f32[6,32,16], index: 2, kind: input, shape index: {}]   ;;  %s3739_s3 = inlined_call_operand.vmem [shape: f32[6,48,16], index: 3, kind: input, shape index: {}]   ;;  %s3740_s4 = inlined_call_operand.hbm [shape: f32[2,32,128], index: 4, kind: output, shape index: {}]  }
   0x1   :  { %11 = vsyncpa [#allocation3 + $0x1], 0  ;;  %s3118_s15 = smov 0   ;;  %s3120_s16 = smov 0  }
   0x2   :  { %s3122_s17 = smov 0   ;;  %s3124_s18 = smov 0  }
   0x3 LB: > { %s3139_s19 = sadd.s32 4294967295, %s3085_s18   ;;  %s2395_s20 = sadd.s32 4294967294, %s3085_s18   ;;  %s3085_s18 = sphi %s3124_s18, %s3746_s18   ;;  %s3081_s17 = sphi %s3122_s17, %s3745_s17   ;;  %s3077_s16 = sphi %s3120_s16, %s3744_s16   ;;  %s3073_s15 = sphi %s3118_s15, %s3743_s15  }
   0x4   : > { %s3143_s21 = sadd.s32 1, %s3085_s18   ;;  %s113_s22 = sadd.s32 1, %s3081_s17 }
   0x5   : > { %s110_s23 = ssub.s32 %s3085_s18, %s3143_s21  ;;  %p123_p0 = scmp.ne.s32.totalorder %s3081_s17, %s3077_s16 }
   0x6   : > { %p111_p1 = scmp.eq.s32.totalorder %s110_s23, 0  ;;  %p124_p2 = scmp.eq.s32.totalorder %s3139_s19, 1 }
   0x7   : > { %p129_p3 = scmp.ne.s32.totalorder %s3077_s16, %s3073_s15  ;;  %p130_p4 = scmp.eq.s32.totalorder %s2395_s20, 1 }
   0x8   : > { %s3154_s24 = scalar_select %p111_p1, %s3081_s17, %s113_s22  }
   0x9   : > { %p3156_p5 = por %p124_p2, %p123_p0  ;;  %p3160_p6 = por %p130_p4, %p129_p3 }
   0xa   : > { %p2398_p7 = scmp.ge.s32.totalorder %s3085_s18, 1  ;;  %p165_p8 = scmp.lt.s32.totalorder %s3085_s18, 3 }
   0xc   : > { %p166_p9 = pnand %p2398_p7, %p165_p8 }
   0xd   : > { %p191_p10 = scmp.lt.s32.totalorder (!%p166_p9), %s3139_s19, 1  ;;  %s3087_s10 = smov (!%p166_p9), 1  }
   0xe   : > { %169 = sbr.rel (%p166_p9) target bundleno = 3358 (0xd1e), region = 36  ;;  %s3088_s13 = smov (!%p166_p9), 2  }
   0xf   : > { %s3090_s20 = smov (!%p166_p9), [#allocation2]  }
  0x10   : > { %s3029_s22 = sshll.u32 (!%p166_p9), %s3090_s20, 4  ;;  %s3030_s22 = int_to_ptr.vmem [resolvable:$false] %s3029_s22 }
  0x11   : > { %s3031_s23 = scalar_lea.vmem (!%p166_p9), %s3030_s22, 1024 }
  0x13   : > { %v209_v0 = vld [vmem:[%s3738_s2 + $0x10] sm:$0xff]  ;;  %vm221_vm0 = vcmask 130048   ;;  %v207_v1 = vld [vmem:[%s3738_s2] sm:$0xff]  ;;  %s192_s5 = scalar_select %p191_p10, %s3139_s19, 1  ;;  %v210_v4 = vld [vmem:[%s3738_s2 + $0x18] sm:$0xff]  ;;  %v196_v31 = vlaneseq }
  0x14   : > { %2714 = vmatprep.mubr.msk.f32.mxu1 %vm221_vm0, %v209_v0  ;;  %2711 = vmatprep.mubr.msk.f32.mxu0 %vm221_vm0, %v207_v1  ;;  %v203_v5 = vld [vmem:[%s3737_s1] sm:$0xff]  ;;  %v208_v6 = vld [vmem:[%s3738_s2 + $0x8] sm:$0xff]  ;;  %v205_v10 = vld [vmem:[%s3737_s1 + $0x10] sm:$0xff] }
  0x15   : > { %s2585_s6 = sshll.u32 %s192_s5, 4  ;;  %v204_v9 = vld [vmem:[%s3737_s1 + $0x8] sm:$0xff]  ;;  %v206_v11 = vld [vmem:[%s3737_s1 + $0x18] sm:$0xff]  ;;  %v211_v12 = vld [vmem:[%s3739_s3] sm:$0xff]  ;;  %v3223_v32 = vand.u32 127, %v196_v31  ;;  %s3089_s5 = smov 4  }
  0x16   : > { %s195_s9 = scalar_lea.vmem %s3736_s0, %s2585_s6  ;;  %v212_v39 = vld [vmem:[%s3739_s3 + $0x8] sm:$0xff]  ;;  %v2424_v40 = vld [vmem:[%s3738_s2 + $0x20] sm:$0xff]  ;;  %v2426_v46 = vld [vmem:[%s3738_s2 + $0x30] sm:$0xff]  ;;  %s188_s6 = sand.u32 1, %s3077_s16  }
  0x17   : > { %v3179_v2 = vld [vmem:[%s195_s9 + $0x8] sm:$0xff]  ;;  %v3184_v3 = vld [vmem:[%s195_s9] sm:$0xff]  ;;  %vm198_vm1 = vcmp.ge.s32.totalorder %v3223_v32, 1  ;;  %v2427_v47 = vld [vmem:[%s3738_s2 + $0x38] sm:$0xff]  ;;  %vm199_vm2 = vcmp.ge.s32.totalorder %v3223_v32, 2  ;;  %vm200_vm3 = vcmp.ge.s32.totalorder %v3223_v32, 4 }
  0x18   : > { %219 = vrot.lane.b32.xlu0 %v3179_v2, %s3087_s10  ;;  %2905 = vmatprep.subr.mxu1 %v3179_v2  ;;  %v2425_v45 = vld [vmem:[%s3738_s2 + $0x28] sm:$0xff]  ;;  %v2420_v48 = vld [vmem:[%s3737_s1 + $0x20] sm:$0xff]  ;;  %v2422_v52 = vld [vmem:[%s3737_s1 + $0x30] sm:$0xff]  ;;  %s2399_s7 = sshll.u32 %s188_s6, 5 }
  0x19   : > { %2907 = vmatpush3.msra.mxu1 %v3179_v2  ;;  %2707 = vmatprep.subr.mxu0 %v3179_v2  ;;  %v2421_v51 = vld [vmem:[%s3737_s1 + $0x28] sm:$0xff]  ;;  %v2423_v53 = vld [vmem:[%s3737_s1 + $0x38] sm:$0xff]  ;;  %v213_v54 = vld [vmem:[%s3739_s3 + $0x10] sm:$0xff]  ;;  %s190_s8 = scalar_lea.vmem [#allocation2], %s2399_s7 }
  0x1a   : > { %2906 = vmatprep.subr.mxu1 %v3184_v3  ;;  %2708 = vmatpush3.msra.mxu0 %v3179_v2  ;;  %v214_v55 = vld [vmem:[%s3739_s3 + $0x18] sm:$0xff]  ;;  %v215_v56 = vld [vmem:[%s3739_s3 + $0x20] sm:$0xff]  ;;  %v216_v57 = vld [vmem:[%s3739_s3 + $0x28] sm:$0xff]  ;;  %s2333_s9 = sshll.u32 %s190_s8, 4  ;;  %s3689_s9 = int_to_ptr.vmem [resolvable:$true] %s2333_s9 }
  0x1b   : > { %2908 = vmatpush3.msra.mxu1 %v3184_v3  ;;  %2709 = vmatprep.subr.mxu0 %v3184_v3  ;;  %v2428_v58 = vld [vmem:[%s3739_s3 + $0x30] sm:$0xff]  ;;  %v2561_v32 = vld [vmem:[%s3739_s3 + $0x118] sm:$0xff]  ;;  %s3025_s14 = scalar_lea.vmem %s3689_s9, 512  ;;  %p3032_p0 = scmp.lt.s32.totalorder %s3689_s9, %s3030_s22 }
  0x1c   : > { %217 = vrot.lane.b32.xlu0 %v3184_v3, %s3087_s10  ;;  %2715 = vmatmul.mubr.msk.f32.vlgmr.msra.gmra.mxu1 %vm221_vm0, %v210_v4  ;;  %p3026_p11 = scmp.ne.s32.totalorder %s3689_s9, %s3025_s14  ;;  %p3033_p1 = scmp.lt.s32.totalorder %s3031_s23, %s3025_s14 }
  0x1d   : > { %2710 = vmatpush3.msra.mxu0 %v3184_v3  ;;  %2721 = vmatprep.mubr.msk.f32.mxu1 %vm221_vm0, %v203_v5 }
  0x1e   : > { %2712 = vmatmul.mubr.msk.f32.vlgmr.msra.gmra.mxu0 %vm221_vm0, %v208_v6  ;;  %p3027_p12 = pnand %p3026_p11, %p3156_p5  ;;  %p3034_p2 = por %p3033_p1, %p3032_p0 }
  0x1f   : > { %2731 = vmatprep.mubr.msk.f32.mxu0 %vm221_vm0, %v211_v12 }
  0x20   : > { %p3028_p13 = pneg %p3027_p12 }
  0x22   : > { %p3035_p3 = pnand %p3034_p2, %p3028_p13 }
  0x8a   : > { %v220_v7 = vpop.permute.xlu0 %219 }
  0x8b   : > { %2717 = vmatprep.subr.mxu1 %v220_v7 }
  0x8c   : > { %2718 = vmatpush3.msra.mxu1 %v220_v7 }
  0x8e   : > { %v218_v8 = vpop.permute.xlu0 %217 }
  0x8f   : > { %2719 = vmatprep.subr.mxu1 %v218_v8 }
  0x90   : > { %2720 = vmatpush3.msra.mxu1 %v218_v8 }
  0x91   : > { %2722 = vmatmul.mubr.msk.f32.vlgmr.msra.gmra.mxu1 %vm221_vm0, %v204_v9 }
  0x92   : > { %2724 = vmatprep.mubr.msk.f32.mxu1 %vm221_vm0, %v205_v10 }
  0x95   : > { %2725 = vmatmul.mubr.msk.f32.gmra.mxu1 %vm221_vm0, %v206_v11 }
  0x96   : > { %2744 = vmatprep.mubr.msk.f32.mxu1 %vm221_vm0, %v2424_v40  ;;  %v2453_v40 = vld [vmem:[%s3737_s1 + $0x48] sm:$0xff] }
  0xdc   : > { %v2716_v13 = vpop.f32.mrf.mxu1 }
  0xde   : > { %v310_v14 = vpop.f32.mrf.mxu1  ;;  %v2713_v23 = vpop.f32.mrf.mxu0 }
  0xe0   : > { %v300_v24 = vpop.f32.mrf.mxu0 }
 0x151   : > { %v2723_v15 = vpop.f32.mrf.mxu1 }
 0x152   : > { %v403_v25 = vadd.f32 %v2723_v15, %v2713_v23  ;;  %v2433_v23 = vld [vmem:[%s3739_s3 + $0x58] sm:$0xff] }
 0x153   : > { %v397_v16 = vpop.f32.mrf.mxu1 }
 0x154   : > { %v398_v27 = vadd.f32 %v397_v16, %v300_v24 }
 0x155   : > { %v2726_v17 = vpop.f32.mrf.mxu1 }
 0x156   : > { %v413_v18 = vadd.f32 %v2726_v17, %v2716_v13 }
 0x157   : > { %v407_v19 = vpop.f32.mrf.mxu1 }
 0x158   : > { %v2411_v20 = vmul.f32 -1.442695, %v413_v18  ;;  %v408_v21 = vadd.f32 %v407_v19, %v310_v14  ;;  %v2429_v19 = vld [vmem:[%s3739_s3 + $0x38] sm:$0xff] }
 0x15a   : > { %2953 = vpow2.f32 %v2411_v20  ;;  %v2410_v22 = vmul.f32 -1.442695, %v408_v21  ;;  %v2430_v20 = vld [vmem:[%s3739_s3 + $0x40] sm:$0xff]  ;;  %v2431_v21 = vld [vmem:[%s3739_s3 + $0x48] sm:$0xff] }
 0x15c   : > { %2955 = vpow2.f32 %v2410_v22  ;;  %v2432_v22 = vld [vmem:[%s3739_s3 + $0x50] sm:$0xff] }
 0x15d   : > { %2957 = vtanh.f32 %v403_v25 }
 0x167   : > { %v2954_v26 = vpop.eup %2953 }
 0x168   : > { %v425_v28 = vadd.f32 1.0, %v2954_v26  ;;  %v2456_v26 = vld [vmem:[%s3738_s2 + $0x40] sm:$0xff] }
 0x169   : > { %v2956_v29 = vpop.eup %2955 }
 0x16a   : > { %2959 = vrcp.f32 %v425_v28  ;;  %v424_v30 = vadd.f32 1.0, %v2956_v29  ;;  %v2958_v33 = vpop.eup %2957 }
 0x16b   : > { %2961 = vtanh.f32 %v398_v27  ;;  %v2452_v27 = vld [vmem:[%s3737_s1 + $0x40] sm:$0xff] }
 0x16c   : > { %2963 = vrcp.f32 %v424_v30 }
 0x177   : > { %v2960_v34 = vpop.eup %2959 }
 0x178   : > { %v2962_v35 = vpop.eup %2961  ;;  %v431_v36 = vmul.f32 %v2960_v34, %v2958_v33 }
 0x179   : > { %v2964_v37 = vpop.eup %2963 }
 0x17a   : > { %2727 = vmatprep.subr.msk.mxu0 %vm198_vm1, %v431_v36  ;;  %v430_v38 = vmul.f32 %v2964_v37, %v2962_v35  ;;  %v2457_v35 = vld [vmem:[%s3738_s2 + $0x48] sm:$0xff]  ;;  %v2459_v37 = vld [vmem:[%s3738_s2 + $0x58] sm:$0xff] }
 0x17b   : > { %2728 = vmatpush3.msk.msra.mxu0 %vm198_vm1, %v431_v36  ;;  %v2458_v36 = vld [vmem:[%s3738_s2 + $0x50] sm:$0xff] }
 0x17c   : > { %2729 = vmatprep.subr.msk.mxu0 %vm198_vm1, %v430_v38 }
 0x17d   : > { %2730 = vmatpush3.msk.msra.mxu0 %vm198_vm1, %v430_v38 }
 0x17e   : > { %2732 = vmatmul.mubr.msk.f32.vlgmr.msra.gmra.mxu0 %vm221_vm0, %v212_v39 }
 0x17f   : > { %2734 = vmatprep.mubr.msk.f32.mxu0 %vm221_vm0, %v213_v54 }
 0x182   : > { %2735 = vmatmul.mubr.msk.f32.gmra.mxu0 %vm221_vm0, %v214_v55 }
 0x183   : > { %2737 = vmatprep.mubr.msk.f32.mxu0 %vm221_vm0, %v215_v56 }
 0x186   : > { %2738 = vmatmul.mubr.msk.f32.gmra.mxu0 %vm221_vm0, %v216_v57 }
 0x187   : > { %2764 = vmatprep.mubr.msk.f32.mxu0 %vm221_vm0, %v2428_v58 }
 0x23e   : > { %v2733_v41 = vpop.f32.mrf.mxu0 }
 0x23f   : > { %v3243_v42 = vadd.f32 %v2733_v41, %v3179_v2  ;;  %v2454_v41 = vld [vmem:[%s3737_s1 + $0x50] sm:$0xff] }
 0x240   : > { %v520_v43 = vpop.f32.mrf.mxu0 }
 0x241   : > { %v3246_v44 = vadd.f32 %v520_v43, %v3184_v3  ;;  %574 = vrot.lane.b32.xlu1 %v3243_v42, %s3088_s13  ;;  %2740 = vmatprep.subr.mxu1 %v3243_v42  ;;  %v2460_v43 = vld [vmem:[%s3739_s3 + $0x60] sm:$0xff] }
 0x242   : > { %2741 = vmatpush3.msra.mxu1 %v3243_v42  ;;  %v3333_v24 = vpop.f32.mrf.mxu0 }
 0x243   : > { %2742 = vmatprep.subr.mxu1 %v3246_v44 }
 0x244   : > { %2743 = vmatpush3.msra.mxu1 %v3246_v44  ;;  %v3335_v25 = vpop.f32.mrf.mxu0 }
 0x245   : > { %572 = vrot.lane.b32.xlu1 %v3246_v44, %s3088_s13  ;;  %2745 = vmatmul.mubr.msk.f32.vlgmr.msra.gmra.mxu1 %vm221_vm0, %v2425_v45 }
 0x246   : > { %2747 = vmatprep.mubr.msk.f32.mxu1 %vm221_vm0, %v2426_v46  ;;  %v3345_v28 = vpop.f32.mrf.mxu0 }
 0x248   : > { %v3347_v29 = vpop.f32.mrf.mxu0 }
 0x249   : > { %2748 = vmatmul.mubr.msk.f32.gmra.mxu1 %vm221_vm0, %v2427_v47 }
 0x24a   : > { %2754 = vmatprep.mubr.msk.f32.mxu1 %vm221_vm0, %v2420_v48 }
 0x2b3   : > { %v575_v49 = vpop.permute.xlu1 %574 }
 0x2b4   : > { %2750 = vmatprep.subr.mxu1 %v575_v49 }
 0x2b5   : > { %2751 = vmatpush3.msra.mxu1 %v575_v49 }
 0x2b7   : > { %v573_v50 = vpop.permute.xlu1 %572 }
 0x2b8   : > { %2752 = vmatprep.subr.mxu1 %v573_v50 }
 0x2b9   : > { %2753 = vmatpush3.msra.mxu1 %v573_v50 }
 0x2ba   : > { %2755 = vmatmul.mubr.msk.f32.vlgmr.msra.gmra.mxu1 %vm221_vm0, %v2421_v51 }
 0x2bb   : > { %2757 = vmatprep.mubr.msk.f32.mxu1 %vm221_vm0, %v2422_v52 }
 0x2be   : > { %2758 = vmatmul.mubr.msk.f32.gmra.mxu1 %vm221_vm0, %v2423_v53 }
 0x2bf   : > { %2777 = vmatprep.mubr.msk.f32.mxu1 %vm221_vm0, %v2456_v26 }
 0x305   : > { %v2746_v59 = vpop.f32.mrf.mxu1 }
 0x307   : > { %v654_v60 = vpop.f32.mrf.mxu1 }
 0x309   : > { %v2749_v61 = vpop.f32.mrf.mxu1 }
 0x30b   : > { %v664_v62 = vpop.f32.mrf.mxu1 }
 0x37a   : > { %v2756_v63 = vpop.f32.mrf.mxu1 }
 0x37b   : > { %v757_v7 = vadd.f32 %v2756_v63, %v2746_v59 }
 0x37c   : > { %v751_v0 = vpop.f32.mrf.mxu1 }
 0x37d   : > { %v752_v9 = vadd.f32 %v751_v0, %v654_v60 }
 0x37e   : > { %v2759_v1 = vpop.f32.mrf.mxu1 }
 0x37f   : > { %v767_v2 = vadd.f32 %v2759_v1, %v2749_v61 }
 0x380   : > { %v761_v3 = vpop.f32.mrf.mxu1 }
 0x381   : > { %v2443_v4 = vmul.f32 -1.442695, %v767_v2  ;;  %v762_v5 = vadd.f32 %v761_v3, %v664_v62 }
 0x383   : > { %2965 = vpow2.f32 %v2443_v4  ;;  %v2442_v6 = vmul.f32 -1.442695, %v762_v5 }
 0x385   : > { %2967 = vpow2.f32 %v2442_v6 }
 0x386   : > { %2969 = vtanh.f32 %v757_v7 }
 0x390   : > { %v2966_v8 = vpop.eup %2965 }
 0x391   : > { %v779_v10 = vadd.f32 1.0, %v2966_v8  ;;  %v2461_v8 = vld [vmem:[%s3739_s3 + $0x68] sm:$0xff] }
 0x392   : > { %v2968_v11 = vpop.eup %2967 }
 0x393   : > { %2971 = vrcp.f32 %v779_v10  ;;  %v778_v12 = vadd.f32 1.0, %v2968_v11  ;;  %v2970_v13 = vpop.eup %2969  ;;  %v2463_v10 = vld [vmem:[%s3739_s3 + $0x78] sm:$0xff]  ;;  %v2464_v11 = vld [vmem:[%s3739_s3 + $0x80] sm:$0xff] }
 0x394   : > { %2973 = vtanh.f32 %v752_v9  ;;  %v2462_v9 = vld [vmem:[%s3739_s3 + $0x70] sm:$0xff] }
 0x395   : > { %2975 = vrcp.f32 %v778_v12  ;;  %v2465_v12 = vld [vmem:[%s3739_s3 + $0x88] sm:$0xff] }
 0x3a0   : > { %v2972_v14 = vpop.eup %2971 }
 0x3a1   : > { %v2974_v15 = vpop.eup %2973  ;;  %v785_v16 = vmul.f32 %v2972_v14, %v2970_v13  ;;  %v2488_v13 = vld [vmem:[%s3738_s2 + $0x60] sm:$0xff] }
 0x3a2   : > { %v2976_v17 = vpop.eup %2975  ;;  %v2484_v14 = vld [vmem:[%s3737_s1 + $0x60] sm:$0xff] }
 0x3a3   : > { %2760 = vmatprep.subr.msk.mxu0 %vm199_vm2, %v785_v16  ;;  %v784_v18 = vmul.f32 %v2976_v17, %v2974_v15 }
 0x3a4   : > { %2761 = vmatpush3.msk.msra.mxu0 %vm199_vm2, %v785_v16 }
 0x3a5   : > { %2762 = vmatprep.subr.msk.mxu0 %vm199_vm2, %v784_v18 }
 0x3a6   : > { %2763 = vmatpush3.msk.msra.mxu0 %vm199_vm2, %v784_v18 }
 0x3a7   : > { %2765 = vmatmul.mubr.msk.f32.vlgmr.msra.gmra.mxu0 %vm221_vm0, %v2429_v19 }
 0x3a8   : > { %2767 = vmatprep.mubr.msk.f32.mxu0 %vm221_vm0, %v2430_v20 }
 0x3ab   : > { %2768 = vmatmul.mubr.msk.f32.gmra.mxu0 %vm221_vm0, %v2431_v21  ;;  %v2489_v21 = vld [vmem:[%s3738_s2 + $0x68] sm:$0xff] }
 0x3ac   : > { %2770 = vmatprep.mubr.msk.f32.mxu0 %vm221_vm0, %v2432_v22 }
 0x3af   : > { %2771 = vmatmul.mubr.msk.f32.gmra.mxu0 %vm221_vm0, %v2433_v23 }
 0x3b0   : > { %2787 = vmatprep.mubr.msk.f32.mxu0 %vm221_vm0, %v2452_v27 }
 0x467   : > { %v2766_v30 = vpop.f32.mrf.mxu0 }
 0x468   : > { %v3350_v31 = vadd.f32 %v2766_v30, %v3243_v42  ;;  %v2455_v42 = vld [vmem:[%s3737_s1 + $0x58] sm:$0xff] }
 0x469   : > { %v874_v33 = vpop.f32.mrf.mxu0 }
 0x46a   : > { %v3353_v34 = vadd.f32 %v874_v33, %v3246_v44  ;;  %928 = vrot.lane.b32.xlu0 %v3350_v31, %s3089_s5  ;;  %2773 = vmatprep.subr.mxu1 %v3350_v31 }
 0x46b   : > { %2774 = vmatpush3.msra.mxu1 %v3350_v31  ;;  %v2769_v44 = vpop.f32.mrf.mxu0 }
 0x46c   : > { %926 = vrot.lane.b32.xlu1 %v3353_v34, %s3089_s5  ;;  %2775 = vmatprep.subr.mxu1 %v3353_v34  ;;  %v906_v18 = vadd.f32 %v2769_v44, %v3333_v24  ;;  %v2490_v24 = vld [vmem:[%s3738_s2 + $0x70] sm:$0xff] }
 0x46d   : > { %2776 = vmatpush3.msra.mxu1 %v3353_v34  ;;  %v884_v45 = vpop.f32.mrf.mxu0 }
 0x46e   : > { %2778 = vmatmul.mubr.msk.f32.vlgmr.msra.gmra.mxu1 %vm221_vm0, %v2457_v35  ;;  %v905_v22 = vadd.f32 %v884_v45, %v3335_v25 }
 0x46f   : > { %2780 = vmatprep.mubr.msk.f32.mxu1 %vm221_vm0, %v2458_v36  ;;  %v3391_v46 = vpop.f32.mrf.mxu0  ;;  %v2486_v36 = vld [vmem:[%s3737_s1 + $0x70] sm:$0xff] }
 0x470   : > { %v908_v27 = vadd.f32 %v3391_v46, %v3345_v28  ;;  %v2485_v28 = vld [vmem:[%s3737_s1 + $0x68] sm:$0xff] }
 0x471   : > { %v3393_v48 = vpop.f32.mrf.mxu0 }
 0x472   : > { %2781 = vmatmul.mubr.msk.f32.gmra.mxu1 %vm221_vm0, %v2459_v37  ;;  %v2487_v37 = vld [vmem:[%s3737_s1 + $0x78] sm:$0xff] }
 0x473   : > { %2797 = vmatprep.mubr.msk.f32.mxu1 %vm221_vm0, %v2460_v43 }
 0x4dc   : > { %v929_v38 = vpop.permute.xlu0 %928 }
 0x4dd   : > { %2783 = vmatprep.subr.mxu0 %v929_v38 }
 0x4de   : > { %2784 = vmatpush3.msra.mxu0 %v929_v38  ;;  %v927_v39 = vpop.permute.xlu1 %926  ;;  %v2492_v38 = vld [vmem:[%s3739_s3 + $0x90] sm:$0xff] }
 0x4df   : > { %2785 = vmatprep.subr.mxu0 %v927_v39 }
 0x4e0   : > { %2786 = vmatpush3.msra.mxu0 %v927_v39 }
 0x4e1   : > { %2788 = vmatmul.mubr.msk.f32.vlgmr.msra.gmra.mxu0 %vm221_vm0, %v2453_v40 }
 0x4e2   : > { %2790 = vmatprep.mubr.msk.f32.mxu0 %vm221_vm0, %v2454_v41 }
 0x4e5   : > { %2791 = vmatmul.mubr.msk.f32.gmra.mxu0 %vm221_vm0, %v2455_v42 }
 0x4e6   : > { %2810 = vmatprep.mubr.msk.f32.mxu0 %vm221_vm0, %v2488_v13  ;;  %v2521_v13 = vld [vmem:[%s3738_s2 + $0x88] sm:$0xff] }
 0x52e   : > { %v2779_v47 = vpop.f32.mrf.mxu1 }
 0x530   : > { %v1008_v49 = vpop.f32.mrf.mxu1 }
 0x532   : > { %v2782_v51 = vpop.f32.mrf.mxu1 }
 0x534   : > { %v1018_v55 = vpop.f32.mrf.mxu1 }
 0x5a1   : > { %v2789_v50 = vpop.f32.mrf.mxu0 }
 0x5a2   : > { %v1111_v60 = vadd.f32 %v2789_v50, %v2779_v47 }
 0x5a3   : > { %v1105_v52 = vpop.f32.mrf.mxu0 }
 0x5a4   : > { %v1106_v62 = vadd.f32 %v1105_v52, %v1008_v49 }
 0x5a5   : > { %v2792_v53 = vpop.f32.mrf.mxu0 }
 0x5a6   : > { %v1121_v54 = vadd.f32 %v2792_v53, %v2782_v51 }
 0x5a7   : > { %v1115_v56 = vpop.f32.mrf.mxu0 }
 0x5a8   : > { %v2475_v57 = vmul.f32 -1.442695, %v1121_v54  ;;  %v1116_v58 = vadd.f32 %v1115_v56, %v1018_v55 }
 0x5aa   : > { %2977 = vpow2.f32 %v2475_v57  ;;  %v2474_v59 = vmul.f32 -1.442695, %v1116_v58 }
 0x5ac   : > { %2979 = vpow2.f32 %v2474_v59 }
 0x5ad   : > { %2981 = vtanh.f32 %v1111_v60 }
 0x5b7   : > { %v2978_v61 = vpop.eup %2977 }
 0x5b8   : > { %v1133_v63 = vadd.f32 1.0, %v2978_v61 }
 0x5b9   : > { %v2980_v0 = vpop.eup %2979 }
 0x5ba   : > { %2983 = vrcp.f32 %v1133_v63  ;;  %v1132_v1 = vadd.f32 1.0, %v2980_v0  ;;  %v2982_v2 = vpop.eup %2981 }
 0x5bb   : > { %2985 = vtanh.f32 %v1106_v62 }
 0x5bc   : > { %2987 = vrcp.f32 %v1132_v1  ;;  %v2493_v1 = vld [vmem:[%s3739_s3 + $0x98] sm:$0xff] }
 0x5c7   : > { %v2984_v3 = vpop.eup %2983 }
 0x5c8   : > { %v2986_v4 = vpop.eup %2985  ;;  %v1139_v5 = vmul.f32 %v2984_v3, %v2982_v2  ;;  %v2494_v2 = vld [vmem:[%s3739_s3 + $0xa0] sm:$0xff]  ;;  %v2495_v3 = vld [vmem:[%s3739_s3 + $0xa8] sm:$0xff] }
 0x5c9   : > { %v2988_v6 = vpop.eup %2987 }
 0x5ca   : > { %2793 = vmatprep.subr.msk.mxu1 %vm200_vm3, %v1139_v5  ;;  %v1138_v7 = vmul.f32 %v2988_v6, %v2986_v4  ;;  %v2496_v4 = vld [vmem:[%s3739_s3 + $0xb0] sm:$0xff]  ;;  %v2520_v6 = vld [vmem:[%s3738_s2 + $0x80] sm:$0xff] }
 0x5cb   : > { %2794 = vmatpush3.msk.msra.mxu1 %vm200_vm3, %v1139_v5  ;;  %v2497_v5 = vld [vmem:[%s3739_s3 + $0xb8] sm:$0xff] }
 0x5cc   : > { %2795 = vmatprep.subr.msk.mxu1 %vm200_vm3, %v1138_v7 }
 0x5cd   : > { %2796 = vmatpush3.msk.msra.mxu1 %vm200_vm3, %v1138_v7  ;;  %v2516_v7 = vld [vmem:[%s3737_s1 + $0x80] sm:$0xff] }
 0x5ce   : > { %2798 = vmatmul.mubr.msk.f32.vlgmr.msra.gmra.mxu1 %vm221_vm0, %v2461_v8 }
 0x5cf   : > { %2800 = vmatprep.mubr.msk.f32.mxu1 %vm221_vm0, %v2462_v9 }
 0x5d2   : > { %2801 = vmatmul.mubr.msk.f32.gmra.mxu1 %vm221_vm0, %v2463_v10 }
 0x5d3   : > { %2803 = vmatprep.mubr.msk.f32.mxu1 %vm221_vm0, %v2464_v11 }
 0x5d6   : > { %2804 = vmatmul.mubr.msk.f32.gmra.mxu1 %vm221_vm0, %v2465_v12 }
 0x5d7   : > { %2820 = vmatprep.mubr.msk.f32.mxu1 %vm221_vm0, %v2484_v14 }
 0x68e   : > { %v2799_v15 = vpop.f32.mrf.mxu1 }
 0x68f   : > { %v3433_v16 = vadd.f32 %v2799_v15, %v3350_v31  ;;  %v2491_v31 = vld [vmem:[%s3738_s2 + $0x78] sm:$0xff]  ;;  %v2522_v15 = vld [vmem:[%s3738_s2 + $0x90] sm:$0xff] }
 0x690   : > { %v1228_v17 = vpop.f32.mrf.mxu1 }
 0x691   : > { %v3437_v19 = vadd.f32 %v1228_v17, %v3353_v34  ;;  %1282 = vrot.lane.b32.xlu0 %v3433_v16, %s3087_s10  ;;  %2806 = vmatprep.subr.mxu0 %v3433_v16 }
 0x692   : > { %v2802_v20 = vpop.f32.mrf.mxu1  ;;  %2807 = vmatpush3.msra.mxu0 %v3433_v16 }
 0x693   : > { %v3447_v23 = vadd.f32 %v2802_v20, %v906_v18  ;;  %1280 = vrot.lane.b32.xlu1 %v3437_v19, %s3087_s10  ;;  %2808 = vmatprep.subr.mxu0 %v3437_v19 }
 0x694   : > { %v1238_v26 = vpop.f32.mrf.mxu1  ;;  %2809 = vmatpush3.msra.mxu0 %v3437_v19 }
 0x695   : > { %v3458_v30 = vadd.f32 %v1238_v26, %v905_v22  ;;  %2811 = vmatmul.mubr.msk.f32.vlgmr.msra.gmra.mxu0 %vm221_vm0, %v2489_v21  ;;  %v2519_v26 = vld [vmem:[%s3737_s1 + $0x98] sm:$0xff] }
 0x696   : > { %v2805_v25 = vpop.f32.mrf.mxu1  ;;  %2813 = vmatprep.mubr.msk.f32.mxu0 %vm221_vm0, %v2490_v24  ;;  %v2518_v24 = vld [vmem:[%s3737_s1 + $0x90] sm:$0xff] }
 0x697   : > { %v3465_v33 = vadd.f32 %v2805_v25, %v908_v27  ;;  %v2524_v27 = vld [vmem:[%s3739_s3 + $0xc0] sm:$0xff] }
 0x698   : > { %v3484_v40 = vpop.f32.mrf.mxu1 }
 0x699   : > { %2814 = vmatmul.mubr.msk.f32.gmra.mxu0 %vm221_vm0, %v2491_v31 }
 0x69a   : > { %2830 = vmatprep.mubr.msk.f32.mxu0 %vm221_vm0, %v2492_v38 }
 0x703   : > { %v1283_v34 = vpop.permute.xlu0 %1282 }
 0x704   : > { %2816 = vmatprep.subr.mxu1 %v1283_v34 }
 0x705   : > { %2817 = vmatpush3.msra.mxu1 %v1283_v34  ;;  %v1281_v35 = vpop.permute.xlu1 %1280 }
 0x706   : > { %2818 = vmatprep.subr.mxu1 %v1281_v35 }
 0x707   : > { %2819 = vmatpush3.msra.mxu1 %v1281_v35 }
 0x708   : > { %2821 = vmatmul.mubr.msk.f32.vlgmr.msra.gmra.mxu1 %vm221_vm0, %v2485_v28 }
 0x709   : > { %2823 = vmatprep.mubr.msk.f32.mxu1 %vm221_vm0, %v2486_v36 }
 0x70c   : > { %2824 = vmatmul.mubr.msk.f32.gmra.mxu1 %vm221_vm0, %v2487_v37 }
 0x70d   : > { %2843 = vmatprep.mubr.msk.f32.mxu1 %vm221_vm0, %v2520_v6  ;;  %v2554_v6 = vld [vmem:[%s3738_s2 + $0xb0] sm:$0xff] }
 0x755   : > { %v2812_v39 = vpop.f32.mrf.mxu0 }
 0x757   : > { %v1362_v41 = vpop.f32.mrf.mxu0 }
 0x759   : > { %v2815_v43 = vpop.f32.mrf.mxu0 }
 0x75b   : > { %v1372_v47 = vpop.f32.mrf.mxu0 }
 0x7c8   : > { %v2822_v42 = vpop.f32.mrf.mxu1 }
 0x7c9   : > { %v1465_v53 = vadd.f32 %v2822_v42, %v2812_v39 }
 0x7ca   : > { %v1459_v44 = vpop.f32.mrf.mxu1 }
 0x7cb   : > { %v1460_v55 = vadd.f32 %v1459_v44, %v1362_v41 }
 0x7cc   : > { %v2825_v45 = vpop.f32.mrf.mxu1 }
 0x7cd   : > { %v1475_v46 = vadd.f32 %v2825_v45, %v2815_v43 }
 0x7ce   : > { %v1469_v49 = vpop.f32.mrf.mxu1 }
 0x7cf   : > { %v2507_v50 = vmul.f32 -1.442695, %v1475_v46  ;;  %v1470_v51 = vadd.f32 %v1469_v49, %v1372_v47 }
 0x7d1   : > { %2989 = vpow2.f32 %v2507_v50  ;;  %v2506_v52 = vmul.f32 -1.442695, %v1470_v51 }
 0x7d3   : > { %2991 = vpow2.f32 %v2506_v52 }
 0x7d4   : > { %2993 = vtanh.f32 %v1465_v53 }
 0x7de   : > { %v2990_v54 = vpop.eup %2989 }
 0x7df   : > { %v1487_v56 = vadd.f32 1.0, %v2990_v54 }
 0x7e0   : > { %v2992_v57 = vpop.eup %2991 }
 0x7e1   : > { %2995 = vrcp.f32 %v1487_v56  ;;  %v1486_v58 = vadd.f32 1.0, %v2992_v57  ;;  %v2994_v59 = vpop.eup %2993  ;;  %v2525_v56 = vld [vmem:[%s3739_s3 + $0xc8] sm:$0xff]  ;;  %v2526_v57 = vld [vmem:[%s3739_s3 + $0xd0] sm:$0xff] }
 0x7e2   : > { %2997 = vtanh.f32 %v1460_v55 }
 0x7e3   : > { %2999 = vrcp.f32 %v1486_v58  ;;  %v2527_v58 = vld [vmem:[%s3739_s3 + $0xd8] sm:$0xff] }
 0x7ee   : > { %v2996_v60 = vpop.eup %2995 }
 0x7ef   : > { %v2998_v61 = vpop.eup %2997  ;;  %v1493_v62 = vmul.f32 %v2996_v60, %v2994_v59  ;;  %v2528_v59 = vld [vmem:[%s3739_s3 + $0xe0] sm:$0xff]  ;;  %v2529_v60 = vld [vmem:[%s3739_s3 + $0xe8] sm:$0xff] }
 0x7f0   : > { %v3000_v63 = vpop.eup %2999 }
 0x7f1   : > { %2826 = vmatprep.subr.msk.mxu0 %vm198_vm1, %v1493_v62  ;;  %v1492_v0 = vmul.f32 %v3000_v63, %v2998_v61  ;;  %v2552_v61 = vld [vmem:[%s3738_s2 + $0xa0] sm:$0xff] }
 0x7f2   : > { %2827 = vmatpush3.msk.msra.mxu0 %vm198_vm1, %v1493_v62  ;;  %v2548_v62 = vld [vmem:[%s3737_s1 + $0xa0] sm:$0xff] }
 0x7f3   : > { %2828 = vmatprep.subr.msk.mxu0 %vm198_vm1, %v1492_v0 }
 0x7f4   : > { %2829 = vmatpush3.msk.msra.mxu0 %vm198_vm1, %v1492_v0 }
 0x7f5   : > { %2831 = vmatmul.mubr.msk.f32.vlgmr.msra.gmra.mxu0 %vm221_vm0, %v2493_v1 }
 0x7f6   : > { %2833 = vmatprep.mubr.msk.f32.mxu0 %vm221_vm0, %v2494_v2 }
 0x7f9   : > { %2834 = vmatmul.mubr.msk.f32.gmra.mxu0 %vm221_vm0, %v2495_v3 }
 0x7fa   : > { %2836 = vmatprep.mubr.msk.f32.mxu0 %vm221_vm0, %v2496_v4  ;;  %v2553_v4 = vld [vmem:[%s3738_s2 + $0xa8] sm:$0xff] }
 0x7fd   : > { %2837 = vmatmul.mubr.msk.f32.gmra.mxu0 %vm221_vm0, %v2497_v5 }
 0x7fe   : > { %2853 = vmatprep.mubr.msk.f32.mxu0 %vm221_vm0, %v2516_v7 }
 0x8b5   : > { %v2832_v8 = vpop.f32.mrf.mxu0 }
 0x8b6   : > { %v3523_v9 = vadd.f32 %v2832_v8, %v3433_v16 }
 0x8b7   : > { %v1580_v10 = vpop.f32.mrf.mxu0 }
 0x8b8   : > { %v3526_v11 = vadd.f32 %v1580_v10, %v3437_v19  ;;  %1634 = vrot.lane.b32.xlu0 %v3523_v9, %s3088_s13  ;;  %2839 = vmatprep.subr.mxu1 %v3523_v9  ;;  %v2523_v19 = vld [vmem:[%s3738_s2 + $0x98] sm:$0xff] }
 0x8b9   : > { %v2835_v12 = vpop.f32.mrf.mxu0  ;;  %2840 = vmatpush3.msra.mxu1 %v3523_v9  ;;  %v2555_v10 = vld [vmem:[%s3738_s2 + $0xb8] sm:$0xff] }
 0x8ba   : > { %v3536_v14 = vadd.f32 %v2835_v12, %v3447_v23  ;;  %1632 = vrot.lane.b32.xlu1 %v3526_v11, %s3088_s13  ;;  %2841 = vmatprep.subr.mxu1 %v3526_v11  ;;  %v2517_v23 = vld [vmem:[%s3737_s1 + $0x88] sm:$0xff]  ;;  %s2586_s13 = sshll.u32 %s3139_s19, 9  ;;  %s3696_s19 = scalar_lea.sflag [#allocation3], %s188_s6 }
 0x8bb   : > { %v1590_v16 = vpop.f32.mrf.mxu0  ;;  %2842 = vmatpush3.msra.mxu1 %v3526_v11  ;;  %s3694_s12 = scalar_lea.hbm %s3740_s4, %s2586_s13 }
 0x8bc   : > { %v3546_v17 = vadd.f32 %v1590_v16, %v3458_v30  ;;  %2844 = vmatmul.mubr.msk.f32.vlgmr.msra.gmra.mxu1 %vm221_vm0, %v2521_v13  ;;  %v2551_v16 = vld [vmem:[%s3737_s1 + $0xb8] sm:$0xff] }
 0x8bd   : > { %v2838_v18 = vpop.f32.mrf.mxu0  ;;  %2846 = vmatprep.mubr.msk.f32.mxu1 %vm221_vm0, %v2522_v15  ;;  %v2550_v15 = vld [vmem:[%s3737_s1 + $0xb0] sm:$0xff] }
 0x8be   : > { %v3554_v20 = vadd.f32 %v2838_v18, %v3465_v33 }
 0x8bf   : > { %v3573_v25 = vpop.f32.mrf.mxu0 }
 0x8c0   : > { %2847 = vmatmul.mubr.msk.f32.gmra.mxu1 %vm221_vm0, %v2523_v19 }
 0x8c1   : > { %2863 = vmatprep.mubr.msk.f32.mxu1 %vm221_vm0, %v2524_v27 }
 0x92a   : > { %v1635_v21 = vpop.permute.xlu0 %1634 }
 0x92b   : > { %2849 = vmatprep.subr.mxu0 %v1635_v21 }
 0x92c   : > { %2850 = vmatpush3.msra.mxu0 %v1635_v21  ;;  %v1633_v22 = vpop.permute.xlu1 %1632 }
 0x92d   : > { %2851 = vmatprep.subr.mxu0 %v1633_v22 }
 0x92e   : > { %2852 = vmatpush3.msra.mxu0 %v1633_v22 }
 0x92f   : > { %2854 = vmatmul.mubr.msk.f32.vlgmr.msra.gmra.mxu0 %vm221_vm0, %v2517_v23 }
 0x930   : > { %2856 = vmatprep.mubr.msk.f32.mxu0 %vm221_vm0, %v2518_v24 }
 0x933   : > { %2857 = vmatmul.mubr.msk.f32.gmra.mxu0 %vm221_vm0, %v2519_v26 }
 0x934   : > { %2876 = vmatprep.mubr.msk.f32.mxu0 %vm221_vm0, %v2552_v61 }
 0x97c   : > { %v2845_v30 = vpop.f32.mrf.mxu1 }
 0x97e   : > { %v1714_v31 = vpop.f32.mrf.mxu1 }
 0x980   : > { %v2848_v34 = vpop.f32.mrf.mxu1 }
 0x982   : > { %v1724_v37 = vpop.f32.mrf.mxu1 }
 0x9ef   : > { %v2855_v33 = vpop.f32.mrf.mxu0 }
 0x9f0   : > { %v1817_v43 = vadd.f32 %v2855_v33, %v2845_v30 }
 0x9f1   : > { %v1811_v35 = vpop.f32.mrf.mxu0 }
 0x9f2   : > { %v1812_v45 = vadd.f32 %v1811_v35, %v1714_v31 }
 0x9f3   : > { %v2858_v28 = vpop.f32.mrf.mxu0 }
 0x9f4   : > { %v1827_v36 = vadd.f32 %v2858_v28, %v2848_v34 }
 0x9f5   : > { %v1821_v38 = vpop.f32.mrf.mxu0 }
 0x9f6   : > { %v2539_v39 = vmul.f32 -1.442695, %v1827_v36  ;;  %v1822_v41 = vadd.f32 %v1821_v38, %v1724_v37 }
 0x9f8   : > { %3001 = vpow2.f32 %v2539_v39  ;;  %v2538_v42 = vmul.f32 -1.442695, %v1822_v41 }
 0x9fa   : > { %3003 = vpow2.f32 %v2538_v42 }
 0x9fb   : > { %3005 = vtanh.f32 %v1817_v43 }
 0xa05   : > { %v3002_v44 = vpop.eup %3001 }
 0xa06   : > { %v1839_v46 = vadd.f32 1.0, %v3002_v44 }
 0xa07   : > { %v3004_v47 = vpop.eup %3003 }
 0xa08   : > { %3007 = vrcp.f32 %v1839_v46  ;;  %v1838_v49 = vadd.f32 1.0, %v3004_v47  ;;  %v3006_v50 = vpop.eup %3005  ;;  %v2557_v47 = vld [vmem:[%s3739_s3 + $0xf8] sm:$0xff] }
 0xa09   : > { %3009 = vtanh.f32 %v1812_v45 }
 0xa0a   : > { %3011 = vrcp.f32 %v1838_v49  ;;  %v2558_v49 = vld [vmem:[%s3739_s3 + $0x100] sm:$0xff] }
 0xa15   : > { %v3008_v51 = vpop.eup %3007 }
 0xa16   : > { %v3010_v52 = vpop.eup %3009  ;;  %v1845_v53 = vmul.f32 %v3008_v51, %v3006_v50  ;;  %v2559_v50 = vld [vmem:[%s3739_s3 + $0x108] sm:$0xff]  ;;  %v2560_v51 = vld [vmem:[%s3739_s3 + $0x110] sm:$0xff] }
 0xa17   : > { %v3012_v54 = vpop.eup %3011 }
 0xa18   : > { %2859 = vmatprep.subr.msk.mxu1 %vm199_vm2, %v1845_v53  ;;  %v1844_v55 = vmul.f32 %v3012_v54, %v3010_v52  ;;  %v907_v54 = vadd.f32 %v3393_v48, %v3347_v29 }
 0xa19   : > { %2860 = vmatpush3.msk.msra.mxu1 %vm199_vm2, %v1845_v53 }
 0xa1a   : > { %2861 = vmatprep.subr.msk.mxu1 %vm199_vm2, %v1844_v55 }
 0xa1b   : > { %2862 = vmatpush3.msk.msra.mxu1 %vm199_vm2, %v1844_v55 }
 0xa1c   : > { %2864 = vmatmul.mubr.msk.f32.vlgmr.msra.gmra.mxu1 %vm221_vm0, %v2525_v56  ;;  %v1261_v56 = vadd.f32 %v3484_v40, %v907_v54 }
 0xa1d   : > { %2866 = vmatprep.mubr.msk.f32.mxu1 %vm221_vm0, %v2526_v57 }
 0xa20   : > { %2867 = vmatmul.mubr.msk.f32.gmra.mxu1 %vm221_vm0, %v2527_v58 }
 0xa21   : > { %2869 = vmatprep.mubr.msk.f32.mxu1 %vm221_vm0, %v2528_v59  ;;  %v1613_v59 = vadd.f32 %v3573_v25, %v1261_v56 }
 0xa24   : > { %2870 = vmatmul.mubr.msk.f32.gmra.mxu1 %vm221_vm0, %v2529_v60 }
 0xa25   : > { %2886 = vmatprep.mubr.msk.f32.mxu1 %vm221_vm0, %v2548_v62 }
 0xadc   : > { %v2865_v63 = vpop.f32.mrf.mxu1 }
 0xadd   : > { %v1962_v0 = vadd.f32 %v2865_v63, %v3523_v9 }
 0xade   : > { %v1932_v1 = vpop.f32.mrf.mxu1 }
 0xadf   : > { %v1961_v2 = vadd.f32 %v1932_v1, %v3526_v11  ;;  %1986 = vrot.lane.b32.xlu0 %v1962_v0, %s3089_s5  ;;  %2872 = vmatprep.subr.mxu0 %v1962_v0 }
 0xae0   : > { %v2868_v3 = vpop.f32.mrf.mxu1  ;;  %2873 = vmatpush3.msra.mxu0 %v1962_v0 }
 0xae1   : > { %v3618_v5 = vadd.f32 %v2868_v3, %v3536_v14  ;;  %1984 = vrot.lane.b32.xlu1 %v1961_v2, %s3089_s5  ;;  %2874 = vmatprep.subr.mxu0 %v1961_v2  ;;  %v2549_v14 = vld [vmem:[%s3737_s1 + $0xa8] sm:$0xff] }
 0xae2   : > { %v1942_v7 = vpop.f32.mrf.mxu1  ;;  %2875 = vmatpush3.msra.mxu0 %v1961_v2 }
 0xae3   : > { %v3625_v8 = vadd.f32 %v1942_v7, %v3546_v17  ;;  %2877 = vmatmul.mubr.msk.f32.vlgmr.msra.gmra.mxu0 %vm221_vm0, %v2553_v4  ;;  %v2556_v17 = vld [vmem:[%s3739_s3 + $0xf0] sm:$0xff] }
 0xae4   : > { %v2871_v9 = vpop.f32.mrf.mxu1  ;;  %2879 = vmatprep.mubr.msk.f32.mxu0 %vm221_vm0, %v2554_v6 }
 0xae5   : > { %v3633_v11 = vadd.f32 %v2871_v9, %v3554_v20 }
 0xae6   : > { %v1952_v19 = vpop.f32.mrf.mxu1 }
 0xae7   : > { %2880 = vmatmul.mubr.msk.f32.gmra.mxu0 %vm221_vm0, %v2555_v10  ;;  %v1965_v62 = vadd.f32 %v1952_v19, %v1613_v59 }
 0xae8   : > { %2896 = vmatprep.mubr.msk.f32.mxu0 %vm221_vm0, %v2556_v17 }
 0xb51   : > { %v1987_v12 = vpop.permute.xlu0 %1986 }
 0xb52   : > { %2882 = vmatprep.subr.mxu1 %v1987_v12 }
 0xb53   : > { %2883 = vmatpush3.msra.mxu1 %v1987_v12  ;;  %v1985_v13 = vpop.permute.xlu1 %1984 }
 0xb54   : > { %2884 = vmatprep.subr.mxu1 %v1985_v13 }
 0xb55   : > { %2885 = vmatpush3.msra.mxu1 %v1985_v13 }
 0xb56   : > { %2887 = vmatmul.mubr.msk.f32.vlgmr.msra.gmra.mxu1 %vm221_vm0, %v2549_v14 }
 0xb57   : > { %2889 = vmatprep.mubr.msk.f32.mxu1 %vm221_vm0, %v2550_v15 }
 0xb5a   : > { %2890 = vmatmul.mubr.msk.f32.gmra.mxu1 %vm221_vm0, %v2551_v16 }
 0xba3   : > { %v2878_v18 = vpop.f32.mrf.mxu0 }
 0xba5   : > { %v2066_v20 = vpop.f32.mrf.mxu0 }
 0xba7   : > { %v2881_v23 = vpop.f32.mrf.mxu0 }
 0xba9   : > { %v2076_v27 = vpop.f32.mrf.mxu0 }
 0xc16   : > { %v2888_v21 = vpop.f32.mrf.mxu1 }
 0xc17   : > { %v2169_v35 = vadd.f32 %v2888_v21, %v2878_v18 }
 0xc18   : > { %v2163_v22 = vpop.f32.mrf.mxu1 }
 0xc19   : > { %v2164_v36 = vadd.f32 %v2163_v22, %v2066_v20 }
 0xc1a   : > { %v2891_v24 = vpop.f32.mrf.mxu1 }
 0xc1b   : > { %v2179_v26 = vadd.f32 %v2891_v24, %v2881_v23 }
 0xc1c   : > { %v2173_v30 = vpop.f32.mrf.mxu1 }
 0xc1d   : > { %v2571_v31 = vmul.f32 -1.442695, %v2179_v26  ;;  %v2174_v33 = vadd.f32 %v2173_v30, %v2076_v27 }
 0xc1f   : > { %3013 = vpow2.f32 %v2571_v31  ;;  %v2570_v34 = vmul.f32 -1.442695, %v2174_v33 }
 0xc21   : > { %3015 = vpow2.f32 %v2570_v34 }
 0xc22   : > { %3017 = vtanh.f32 %v2169_v35 }
 0xc2c   : > { %v3014_v28 = vpop.eup %3013 }
 0xc2d   : > { %v2191_v37 = vadd.f32 1.0, %v3014_v28 }
 0xc2e   : > { %v3016_v38 = vpop.eup %3015 }
 0xc2f   : > { %3019 = vrcp.f32 %v2191_v37  ;;  %v2190_v39 = vadd.f32 1.0, %v3016_v38  ;;  %v3018_v41 = vpop.eup %3017 }
 0xc30   : > { %3021 = vtanh.f32 %v2164_v36 }
 0xc31   : > { %3023 = vrcp.f32 %v2190_v39 }
 0xc3c   : > { %v3020_v42 = vpop.eup %3019 }
 0xc3d   : > { %v3022_v43 = vpop.eup %3021  ;;  %v2197_v44 = vmul.f32 %v3020_v42, %v3018_v41 }
 0xc3e   : > { %v3024_v45 = vpop.eup %3023 }
 0xc3f   : > { %2892 = vmatprep.subr.msk.mxu0 %vm200_vm3, %v2197_v44  ;;  %v2196_v46 = vmul.f32 %v3024_v45, %v3022_v43 }
 0xc40   : > { %2893 = vmatpush3.msk.msra.mxu0 %vm200_vm3, %v2197_v44 }
 0xc41   : > { %2894 = vmatprep.subr.msk.mxu0 %vm200_vm3, %v2196_v46 }
 0xc42   : > { %2895 = vmatpush3.msk.msra.mxu0 %vm200_vm3, %v2196_v46 }
 0xc43   : > { %2897 = vmatmul.mubr.msk.f32.vlgmr.msra.gmra.mxu0 %vm221_vm0, %v2557_v47 }
 0xc44   : > { %2899 = vmatprep.mubr.msk.f32.mxu0 %vm221_vm0, %v2558_v49 }
 0xc47   : > { %2900 = vmatmul.mubr.msk.f32.gmra.mxu0 %vm221_vm0, %v2559_v50 }
 0xc48   : > { %2902 = vmatprep.mubr.msk.f32.mxu0 %vm221_vm0, %v2560_v51 }
 0xc4b   : > { %2903 = vmatmul.mubr.msk.f32.gmra.mxu0 %vm221_vm0, %v2561_v32 }
 0xd03   : > { %v2898_v52 = vpop.f32.mrf.mxu0 }
 0xd05   : > { %v2284_v53 = vpop.f32.mrf.mxu0 }
 0xd07   : > { %v2901_v55 = vpop.f32.mrf.mxu0 }
 0xd08   : > { %v2312_v57 = vadd.f32 %v2901_v55, %v3618_v5 }
 0xd09   : > { %v2292_v58 = vpop.f32.mrf.mxu0 }
 0xd0a   : > { %2316 = vst [vmem:[%s190_s8 + $0x8] sm:$0xff] %v2312_v57  ;;  %v2311_v60 = vadd.f32 %v2292_v58, %v3625_v8 }
 0xd0b   : > { %v2904_v61 = vpop.f32.mrf.mxu0 }
 0xd0c   : > { %2315 = vst [vmem:[%s190_s8] sm:$0xff] %v2311_v60  ;;  %v2314_v29 = vadd.f32 %v2904_v61, %v3633_v11 }
 0xd0d   : > { %v2302_v48 = vpop.f32.mrf.mxu0 }
 0xd0e   : > { %2318 = vst [vmem:[%s190_s8 + $0x18] sm:$0xff] %v2314_v29  ;;  %v2313_v40 = vadd.f32 %v2302_v48, %v1965_v62 }
 0xd10   : > { %2317 = vst [vmem:[%s190_s8 + $0x10] sm:$0xff] %v2313_v40 }
 0xd11   : > { %3038 = shalt.err (!%p3035_p3)
}
 0xd12   : > { %s3039_s27 = scalar_lea.hbm %s3694_s12, 512  ;;  %s3043_s30 = scalar_lea.hbm %s3740_s4, 1024 }
 0xd13   : > { %p3040_p4 = scmp.ne.s32.totalorder %s3694_s12, %s3039_s27  ;;  %p3044_p9 = scmp.lt.s32.totalorder %s3694_s12, %s3740_s4 }
 0xd14   : > { %p3045_p10 = scmp.lt.s32.totalorder %s3043_s30, %s3039_s27 }
 0xd15   : > { %p3041_p7 = pnand %p3040_p4, %p3156_p5 }
 0xd16   : > { %p3046_p11 = por %p3045_p10, %p3044_p9 }
 0xd17   : > { %p3042_p8 = pneg %p3041_p7 }
 0xd19   : > { %p3047_p12 = pnand %p3046_p11, %p3042_p8 }
 0xd1b   : > { %3050 = shalt.err (!%p3047_p12)
}
 0xd1c   : > { %s3091_s7 = smov 128   ;;  %s3092_s8 = smov 8  }
 0xd1d   : > { %2909 = dma.vmem_to_hbm [thread:$0]  (%p3156_p5), %s3689_s9, 512, %s3694_s12, %s3696_s19, %s3091_s7, %s3091_s7, %s3092_s8  }
 0xd1e PF: > { %p2915_p13 = scmp.ge.s32.totalorder %s3085_s18, 2  ;;  %s2348_s13 = sand.u32 1, %s3073_s15  }
 0xd1f   : > { %s2349_s10 = scalar_lea.sflag [#allocation3], %s2348_s13 }
 0xd20   : > { %p2912_p0 = pnand %p2915_p13, %p3160_p6 }
 0xd22   : > { %p2913_p1 = pneg %p2912_p0 }
 0xd24   : > { %3068 = dma.done.wait (%p2913_p1), %s2349_s10, 512  }
 0xd25   : > { %3070 = vsyncadd (%p2913_p1), %s2349_s10, 4294966784  ;;  %p14_p2 = scmp.ge.s32.totalorder %s3143_s21, 4   ;;  %s3743_s15 = smov %s3077_s16 }
 0xd26   : > { %s3744_s16 = smov %s3081_s17  ;;  %s3745_s17 = smov %s3154_s24 }
 0xd27   : > { %s3746_s18 = smov %s3143_s21  ;;  %16 = sbr.rel (!%p14_p2) target bundleno = 3 (0x3), region = 86 }
 0xd2c   :  { %2354 = vsyncpa [#allocation3], 1 }
 0xd2d   :  { %2356 = vsyncpa [#allocation3 + $0x1], 1 }

</bundles_post_ra>
